<compile_context>
chip_gen: v6e
topology: v6e:2x2x1
jax: 0.10.0
libtpu: 0.0.40
codegen_flags: <defaults>
</compile_context>

<pallas_src>
import functools

import jax
import jax.numpy as jnp
from jax.experimental import pallas as pl
from jax.experimental.pallas import tpu as pltpu

NEG = -1e9  # finite "-inf" (avoids NaN from inf-inf in log-space math)


def _const_spec(arr):
    # Whole-array block, same block for every grid step (stays VMEM-resident).
    nd = arr.ndim
    return pl.BlockSpec(arr.shape, lambda *_: (0,) * nd)


def _per_layer_spec(arr):
    # One layer's slab per grid step along the leading L dim.
    nd = arr.ndim
    return pl.BlockSpec((1,) + arr.shape[1:], lambda l: (l,) + (0,) * (nd - 1))


def _ln(x, g, b, eps):
    mu = jnp.mean(x, axis=-1, keepdims=True)
    var = jnp.mean(jnp.square(x - mu), axis=-1, keepdims=True)
    return (x - mu) * jax.lax.rsqrt(var + eps) * g + b


# ------------------ Kernel 1: fused BERT encoder stack -----------------------
def _encoder_stack_kernel(emb_ref, elng_ref, elnb_ref, bias_ref,
                          wqkv_ref, bqkv_ref, wo_ref, bo_ref,
                          ln1g_ref, ln1b_ref, w1_ref, b1_ref, w2_ref, b2_ref,
                          ln2g_ref, ln2b_ref, o_ref, *, B, S, n_heads, eps):
    # Embedding LayerNorm folded into the first grid step; the output block is
    # resident across the whole (L,) grid and doubles as the activation buffer.
    @pl.when(pl.program_id(0) == 0)
    def _():
        o_ref[...] = _ln(emb_ref[...], elng_ref[...], elnb_ref[...], eps)

    x = o_ref[...]                                  # (B*S, H) f32
    H = x.shape[-1]
    dh = H // n_heads

    def mm(a, w):                                   # bf16 MXU, f32 accumulate
        return jnp.dot(a.astype(jnp.bfloat16), w,
                       preferred_element_type=jnp.float32)

    # Fused QKV projection for the whole flattened batch (scale pre-folded
    # into the Q weights/bias at prep time).
    qkv = mm(x, wqkv_ref[0]) + bqkv_ref[0]          # (B*S, 3H)
    qkv3 = qkv.reshape(B, S, 3 * H)

    # Hoisted: mask bias broadcast to (B, S, S) once, not per head.
    bias = jnp.broadcast_to(bias_ref[...], (B, S, S))

    wo = wo_ref[0]                                  # (n_heads, dh, H) bf16
    attn = None
    for h in range(n_heads):
        qh = qkv3[:, :, h * dh:(h + 1) * dh]
        kh = qkv3[:, :, H + h * dh:H + (h + 1) * dh]
        vh = qkv3[:, :, 2 * H + h * dh:2 * H + (h + 1) * dh]
        s = jnp.einsum("bqd,bkd->bqk", qh, kh,
                       preferred_element_type=jnp.float32) + bias
        m = jnp.max(s, axis=-1, keepdims=True)
        p = jnp.exp(s - m)
        p = p * pl.reciprocal(jnp.sum(p, axis=-1, keepdims=True), approx=True)
        ctx = jnp.einsum("bqk,bkd->bqd", p.astype(jnp.bfloat16),
                         vh.astype(jnp.bfloat16),
                         preferred_element_type=jnp.float32)     # (B, S, dh)
        # Head concat folded into the out-projection: accumulate partials.
        part = jnp.dot(ctx.reshape(B * S, dh).astype(jnp.bfloat16), wo[h],
                       preferred_element_type=jnp.float32)       # (B*S, H)
        attn = part if attn is None else attn + part

    attn = attn + bo_ref[0]
    x1 = _ln(attn + x, ln1g_ref[0], ln1b_ref[0], eps)
    # TODO(synk): HF BERT uses exact erf GELU; tanh approximation used here.
    ff = jax.nn.gelu(mm(x1, w1_ref[0]) + b1_ref[0], approximate=True)
    ff2 = mm(ff, w2_ref[0]) + b2_ref[0]
    o_ref[...] = _ln(ff2 + x1, ln2g_ref[0], ln2b_ref[0], eps)


def bert_encode(prep, x_ids, segment_ids, mask_f):
    p = prep["bert"]
    B, S = x_ids.shape
    H = p["word_emb"].shape[1]
    L = p["wqkv"].shape[0]

    # Embedding gather is glue (plain JAX); compute-heavy parts are in kernels.
    emb = (p["word_emb"][x_ids] + p["pos_emb"][:S][None, :, :]
           + p["type_emb"][segment_ids])                    # (B, S, H)
    emb2 = emb.reshape(B * S, H)
    bias3 = ((1.0 - mask_f) * NEG).reshape(B, 1, S)         # additive attn mask

    const_args = [emb2, p["emb_ln_g"], p["emb_ln_b"], bias3]
    layer_args = [p["wqkv"], p["bqkv"], p["wo"], p["bo"],
                  p["ln1_g"], p["ln1_b"], p["w1"], p["b1"],
                  p["w2"], p["b2"], p["ln2_g"], p["ln2_b"]]
    # NOTE: at real BERT dims, cap weight buffering (pipeline_mode=pl.Buffered(1)
    # on the per-layer specs) and raise vmem_limit_bytes; unnecessary here.
    return pl.pallas_call(
        functools.partial(_encoder_stack_kernel,
                          B=B, S=S, n_heads=p["n_heads"], eps=1e-12),
        out_shape=jax.ShapeDtypeStruct((B * S, H), jnp.float32),
        grid=(L,),
        in_specs=([_const_spec(a) for a in const_args]
                  + [_per_layer_spec(a) for a in layer_args]),
        out_specs=_const_spec(emb2),
        compiler_params=pltpu.CompilerParams(
            dimension_semantics=("arbitrary",)),
    )(*const_args, *layer_args)


# -------------- Kernel 2: fused BiGRU + Linear + CRF loss --------------------
def _gru_crf_kernel(enc_ref, wih_ref, bih_ref, whh_ref, bhh_ref,
                    wout_ref, bout_ref, tags_ref, mask_ref,
                    st_ref, en_ref, tr_ref, o_ref, *, B, S, Rp):
    x = enc_ref[...].astype(jnp.bfloat16)                  # (B*S, H)

    # One fused input projection for BOTH directions.
    xg_all = (jnp.dot(x, wih_ref[...], preferred_element_type=jnp.float32)
              + bih_ref[...]).reshape(B, S, 6 * Rp)

    whh = whh_ref[...]                                     # (2Rp, 3Rp) bf16
    bhh2 = bhh_ref[...]                                    # (2, 3Rp) f32
    bhh = jnp.concatenate(
        [jnp.broadcast_to(bhh2[0:1, :], (B, 3 * Rp)),
         jnp.broadcast_to(bhh2[1:2, :], (B, 3 * Rp))], axis=0)   # (2B, 3Rp)

    sel_f = (jax.lax.broadcasted_iota(jnp.int32, (2 * B, 1), 0)
             < B).astype(jnp.float32)
    sel_b = 1.0 - sel_f

    def step(h, xg):
        # Single MXU call for both directions: block-diagonal lhs.
        lhs = jnp.concatenate([h * sel_f, h * sel_b], axis=-1)    # (2B, 2Rp)
        gh = jnp.dot(lhs.astype(jnp.bfloat16), whh,
                     preferred_element_type=jnp.float32) + bhh    # (2B, 3Rp)
        r = jax.nn.sigmoid(xg[:, :Rp] + gh[:, :Rp])
        z = jax.nn.sigmoid(xg[:, Rp:2 * Rp] + gh[:, Rp:2 * Rp])
        n = jnp.tanh(xg[:, 2 * Rp:] + r * gh[:, 2 * Rp:])
        return (1.0 - z) * n + z * h

    h = jnp.zeros((2 * B, Rp), jnp.float32)                # [h_fwd ; h_bwd]
    outs_f = [None] * S
    outs_b = [None] * S
    for t in range(S):                                     # unrolled, S static
        tb = S - 1 - t
        xg = jnp.concatenate([xg_all[:, t, :3 * Rp],
                              xg_all[:, tb, 3 * Rp:]], axis=0)    # (2B, 3Rp)
        h = step(h, xg)
        outs_f[t] = h[:B]
        outs_b[tb] = h[B:]

    # One stacked emission matmul; emissions stay in VMEM (rows ordered (t,b)).
    hcat = jnp.concatenate(
        [jnp.concatenate([outs_f[t], outs_b[t]], axis=-1) for t in range(S)],
        axis=0)                                            # (S*B, 2Rp)
    em = (jnp.dot(hcat.astype(jnp.bfloat16), wout_ref[...],
                  preferred_element_type=jnp.float32) + bout_ref[...])  # (S*B, Tp)

    # ----------------------------- CRF NLL ----------------------------------
    Tp = em.shape[-1]
    tags = tags_ref[...]                                   # (S*B, 1) int32
    mask = mask_ref[...]                                   # (S*B, 1) f32
    st, en, tr = st_ref[...], en_ref[...], tr_ref[...]

    iota_t = jax.lax.broadcasted_iota(jnp.int32, (S * B, Tp), 1)
    oh = (iota_t == tags).astype(jnp.float32)              # (S*B, Tp)

    # Gold-path score, fully vectorized over time (outside the recursion).
    # mask rows for t=0 are all-ones for valid inputs -> matches torchcrf.
    emit_sc = jnp.sum(jnp.sum(em * oh, axis=-1, keepdims=True) * mask)
    trans_logits = jnp.dot(oh[:(S - 1) * B], tr,
                           preferred_element_type=jnp.float32)   # ((S-1)B, Tp)
    trans_sc = jnp.sum(jnp.sum(trans_logits * oh[B:], axis=-1, keepdims=True)
                       * mask[B:])
    start_sc = jnp.sum(st * oh[:B])
    mask_next = jnp.concatenate([mask[B:], jnp.zeros((B, 1), jnp.float32)],
                                axis=0)
    is_last = mask * (1.0 - mask_next)                     # one 1 per batch row
    end_sc = jnp.sum(en * (oh * is_last))
    score = start_sc + emit_sc + trans_sc + end_sc

    # Partition function: only the logsumexp alpha recursion stays serial.
    em3 = em.reshape(S, B, Tp)
    mask3 = mask.reshape(S, B, 1)
    c_max = jnp.max(tr, axis=0, keepdims=True)             # (1, Tp)
    ex_tr = jnp.exp(tr - c_max)
    alpha = st + em3[0]                                    # (B, Tp)
    for t in range(1, S):                                  # unrolled, S static
        a_max = jnp.max(alpha, axis=-1, keepdims=True)
        nxt = a_max + c_max + jnp.log(
            jnp.dot(jnp.exp(alpha - a_max), ex_tr,
                    preferred_element_type=jnp.float32)) + em3[t]
        alpha = jnp.where(mask3[t] > 0.5, nxt, alpha)
    final = alpha + en
    f_max = jnp.max(final, axis=-1, keepdims=True)
    logz = jnp.sum(f_max + jnp.log(jnp.sum(jnp.exp(final - f_max),
                                           axis=-1, keepdims=True)))
    o_ref[...] = jnp.reshape(logz - score, (1, 1))


def gru_crf_loss(prep, encoded2d, y_data, mask_f):
    B, S = y_data.shape
    g = prep["gru"]
    crf = prep["crf"]
    Rp = g["Rp"]
    tags = y_data.T.reshape(S * B, 1).astype(jnp.int32)    # row = t*B + b
    mask = mask_f.T.reshape(S * B, 1)
    args = [encoded2d, g["w_ih"], g["b_ih"], g["w_hh"], g["b_hh"],
            g["w_out"], g["b_out"], tags, mask,
            crf["start"], crf["end"], crf["trans"]]
    loss = pl.pallas_call(
        functools.partial(_gru_crf_kernel, B=B, S=S, Rp=Rp),
        out_shape=jax.ShapeDtypeStruct((1, 1), jnp.float32),
        in_specs=[_const_spec(a) for a in args],
        out_specs=pl.BlockSpec((1, 1), lambda *_: (0, 0)),
    )(*args)
    return loss[0, 0]


# ------------------------------ model wiring ---------------------------------
def bert_ner_forward(prep, x_data, y_data, masks, segment_ids):
    mask_f = masks.astype(jnp.float32)
    encoded = bert_encode(prep, x_data, segment_ids, mask_f)   # (B*S, H)
    return gru_crf_loss(prep, encoded, y_data, mask_f)


# ------------------------------ parameters -----------------------------------
def init_params(key, vocab=50, type_vocab=2, max_pos=32, H=32, n_heads=4,
                n_layers=2, ffn=64, R=16, T=7):
    keys = jax.random.split(key, 64)
    it = iter(keys)

    def w(shape, scale=0.02):
        return (scale * jax.random.normal(next(it), shape)).astype(jnp.float32)

    def zeros(n):
        return jnp.zeros((n,), jnp.float32)

    bert = dict(word_emb=w((vocab, H)), pos_emb=w((max_pos, H)),
                type_emb=w((type_vocab, H)),
                emb_ln_g=jnp.ones((H,), jnp.float32), emb_ln_b=zeros(H),
                n_heads=n_heads, layers=[])
    for _ in range(n_layers):
        bert["layers"].append(dict(
            wq=w((H, H)), bq=zeros(H), wk=w((H, H)), bk=zeros(H),
            wv=w((H, H)), bv=zeros(H), wo=w((H, H)), bo=zeros(H),
            ln1_g=jnp.ones((H,), jnp.float32), ln1_b=zeros(H),
            w1=w((H, ffn)), b1=zeros(ffn), w2=w((ffn, H)), b2=zeros(H),
            ln2_g=jnp.ones((H,), jnp.float32), ln2_b=zeros(H)))

    gru = dict(hidden=R,
               w_ih_f=w((H, 3 * R)), b_ih_f=zeros(3 * R),
               w_hh_f=w((R, 3 * R)), b_hh_f=zeros(3 * R),
               w_ih_b=w((H, 3 * R)), b_ih_b=zeros(3 * R),
               w_hh_b=w((R, 3 * R)), b_hh_b=zeros(3 * R))
    linear = dict(w=w((2 * R, T)), b=zeros(T))
    crf = dict(start=w((T,), 0.1), end=w((T,), 0.1), trans=w((T, T), 0.1))
    return dict(bert=bert, gru=gru, linear=linear, crf=crf)


def prepare_params(params, Rp=128, Tp=128):
    """Device-ready parameters: stacked per-layer weights (leading L dim),
    fused+pre-scaled QKV, bf16 matmul weights, fused GRU weights, lane padding."""
    b = params["bert"]
    H = b["word_emb"].shape[1]
    nh = b["n_heads"]
    dh = H // nh
    scale = float(dh) ** -0.5
    L = len(b["layers"])
    F = b["layers"][0]["w1"].shape[1]

    def stk(fn, shape):
        return jnp.stack([fn(l).reshape(shape) for l in b["layers"]], axis=0)

    wqkv = jnp.stack([jnp.concatenate([l["wq"] * scale, l["wk"], l["wv"]],
                                      axis=1) for l in b["layers"]]
                     ).astype(jnp.bfloat16)                        # (L, H, 3H)
    bqkv = jnp.stack([jnp.concatenate([l["bq"] * scale, l["bk"], l["bv"]])
                      for l in b["layers"]]).reshape(L, 1, 3 * H)
    bert = dict(
        word_emb=b["word_emb"], pos_emb=b["pos_emb"], type_emb=b["type_emb"],
        emb_ln_g=b["emb_ln_g"].reshape(1, H),
        emb_ln_b=b["emb_ln_b"].reshape(1, H),
        n_heads=nh, wqkv=wqkv, bqkv=bqkv,
        wo=stk(lambda l: l["wo"], (nh, dh, H)).astype(jnp.bfloat16),
        bo=stk(lambda l: l["bo"], (1, H)),
        ln1_g=stk(lambda l: l["ln1_g"], (1, H)),
        ln1_b=stk(lambda l: l["ln1_b"], (1, H)),
        w1=stk(lambda l: l["w1"], (H, F)).astype(jnp.bfloat16),
        b1=stk(lambda l: l["b1"], (1, F)),
        w2=stk(lambda l: l["w2"], (F, H)).astype(jnp.bfloat16),
        b2=stk(lambda l: l["b2"], (1, H)),
        ln2_g=stk(lambda l: l["ln2_g"], (1, H)),
        ln2_b=stk(lambda l: l["ln2_b"], (1, H)))

    g = params["gru"]
    R = g["hidden"]

    def pad_gate_cols(w):
        parts = [w[..., i * R:(i + 1) * R] for i in range(3)]
        pad = [(0, 0)] * (w.ndim - 1) + [(0, Rp - R)]
        return jnp.concatenate([jnp.pad(p_, pad) for p_ in parts], axis=-1)

    def pad_hh(w):                                  # (R, 3R) -> (Rp, 3Rp)
        return jnp.pad(pad_gate_cols(w), [(0, Rp - R), (0, 0)])

    w_ih = jnp.concatenate([pad_gate_cols(g["w_ih_f"]),
                            pad_gate_cols(g["w_ih_b"])],
                           axis=1).astype(jnp.bfloat16)            # (H, 6Rp)
    b_ih = jnp.concatenate([pad_gate_cols(g["b_ih_f"].reshape(1, -1)),
                            pad_gate_cols(g["b_ih_b"].reshape(1, -1))], axis=1)
    w_hh = jnp.concatenate([pad_hh(g["w_hh_f"]),
                            pad_hh(g["w_hh_b"])],
                           axis=0).astype(jnp.bfloat16)            # (2Rp, 3Rp)
    b_hh = jnp.concatenate([pad_gate_cols(g["b_hh_f"].reshape(1, -1)),
                            pad_gate_cols(g["b_hh_b"].reshape(1, -1))], axis=0)

    lin = params["linear"]
    T = lin["w"].shape[1]
    w_out = jnp.zeros((2 * Rp, Tp), jnp.float32)
    w_out = w_out.at[:R, :T].set(lin["w"][:R])
    w_out = w_out.at[Rp:Rp + R, :T].set(lin["w"][R:])
    gru = dict(Rp=Rp, w_ih=w_ih, b_ih=b_ih, w_hh=w_hh, b_hh=b_hh,
               w_out=w_out.astype(jnp.bfloat16),
               b_out=jnp.pad(lin["b"], (0, Tp - T)).reshape(1, Tp))

    c = params["crf"]
    start = jnp.full((1, Tp), NEG, jnp.float32).at[0, :T].set(c["start"])
    end = jnp.full((1, Tp), NEG, jnp.float32).at[0, :T].set(c["end"])
    trans = jnp.full((Tp, Tp), NEG, jnp.float32).at[:T, :T].set(c["trans"])
    return dict(bert=bert, gru=gru,
                crf=dict(start=start, end=end, trans=trans), Tp=Tp)


if __name__ == "__main__":
    # TODO(synk): BertModel.from_pretrained checkpoint loading has no in-script
    # equivalent; synthetic deterministic weights are used instead.
    B, S, T = 2, 8, 7
    key = jax.random.PRNGKey(0)
    kp, kx, ky = jax.random.split(key, 3)
    params = init_params(kp, T=T)
    prep = prepare_params(params)

    x_data = jax.random.randint(kx, (B, S), 0, 50, dtype=jnp.int32)
    y_data = jax.random.randint(ky, (B, S), 0, T, dtype=jnp.int32)
    lengths = jnp.array([8, 6], dtype=jnp.int32)
    masks = (jnp.arange(S)[None, :] < lengths[:, None]).astype(jnp.int32)
    segment_ids = jnp.zeros((B, S), dtype=jnp.int32)

    loss = bert_ner_forward(prep, x_data, y_data, masks, segment_ids)
    jax.block_until_ready(loss)
    print("KERNEL_OK")
</pallas_src>

<mosaic_0001>
module attributes {stable_mosaic.version = 11 : i64} {
  func.func @_encoder_stack_kernel(%arg0: i32, %arg1: memref<16x32xf32, #tpu.memory_space<vmem>>, %arg2: memref<1x32xf32, #tpu.memory_space<vmem>>, %arg3: memref<1x32xf32, #tpu.memory_space<vmem>>, %arg4: memref<2x1x8xf32, #tpu.memory_space<vmem>>, %arg5: memref<1x32x96xbf16, #tpu.memory_space<vmem>>, %arg6: memref<1x1x96xf32, #tpu.memory_space<vmem>>, %arg7: memref<1x4x8x32xbf16, #tpu.memory_space<vmem>>, %arg8: memref<1x1x32xf32, #tpu.memory_space<vmem>>, %arg9: memref<1x1x32xf32, #tpu.memory_space<vmem>>, %arg10: memref<1x1x32xf32, #tpu.memory_space<vmem>>, %arg11: memref<1x32x64xbf16, #tpu.memory_space<vmem>>, %arg12: memref<1x1x64xf32, #tpu.memory_space<vmem>>, %arg13: memref<1x64x32xbf16, #tpu.memory_space<vmem>>, %arg14: memref<1x1x32xf32, #tpu.memory_space<vmem>>, %arg15: memref<1x1x32xf32, #tpu.memory_space<vmem>>, %arg16: memref<1x1x32xf32, #tpu.memory_space<vmem>>, %arg17: memref<16x32xf32, #tpu.memory_space<vmem>>) attributes {dimension_semantics = [#tpu.dimension_semantics<arbitrary>], iteration_bounds = array<i64: 2>, scalar_prefetch = 0 : i64, scratch_operands = 0 : i64, tpu.core_type = #tpu.core_type<tc>, window_params = [{pipeline_mode = #tpu.pipeline_mode<synchronous>, transform_indices = @transform_0, window_bounds = array<i64: 16, 32>}, {pipeline_mode = #tpu.pipeline_mode<synchronous>, transform_indices = @transform_1, window_bounds = array<i64: 1, 32>}, {pipeline_mode = #tpu.pipeline_mode<synchronous>, transform_indices = @transform_2, window_bounds = array<i64: 1, 32>}, {pipeline_mode = #tpu.pipeline_mode<synchronous>, transform_indices = @transform_3, window_bounds = array<i64: 2, 1, 8>}, {transform_indices = @transform_4, window_bounds = array<i64: 1, 32, 96>}, {transform_indices = @transform_5, window_bounds = array<i64: 1, 1, 96>}, {transform_indices = @transform_6, window_bounds = array<i64: 1, 4, 8, 32>}, {transform_indices = @transform_7, window_bounds = array<i64: 1, 1, 32>}, {transform_indices = @transform_8, window_bounds = array<i64: 1, 1, 32>}, {transform_indices = @transform_9, window_bounds = array<i64: 1, 1, 32>}, {transform_indices = @transform_10, window_bounds = array<i64: 1, 32, 64>}, {transform_indices = @transform_11, window_bounds = array<i64: 1, 1, 64>}, {transform_indices = @transform_12, window_bounds = array<i64: 1, 64, 32>}, {transform_indices = @transform_13, window_bounds = array<i64: 1, 1, 32>}, {transform_indices = @transform_14, window_bounds = array<i64: 1, 1, 32>}, {transform_indices = @transform_15, window_bounds = array<i64: 1, 1, 32>}, {pipeline_mode = #tpu.pipeline_mode<synchronous>, transform_indices = @transform_16, window_bounds = array<i64: 16, 32>}]} {
    %c0_i32 = arith.constant 0 : i32
    %0 = arith.cmpi eq, %arg0, %c0_i32 : i32
    %1 = arith.extui %0 : i1 to i32
    %c0_i32_0 = arith.constant 0 : i32
    %2 = arith.cmpi ne, %1, %c0_i32_0 : i32
    scf.if %2 {
      %c0_80 = arith.constant 0 : index
      %c0_81 = arith.constant 0 : index
      %201 = vector.load %arg1[%c0_80, %c0_81] : memref<16x32xf32, #tpu.memory_space<vmem>>, vector<16x32xf32>
      %c0_82 = arith.constant 0 : index
      %c0_83 = arith.constant 0 : index
      %202 = vector.load %arg2[%c0_82, %c0_83] : memref<1x32xf32, #tpu.memory_space<vmem>>, vector<1x32xf32>
      %c0_84 = arith.constant 0 : index
      %c0_85 = arith.constant 0 : index
      %203 = vector.load %arg3[%c0_84, %c0_85] : memref<1x32xf32, #tpu.memory_space<vmem>>, vector<1x32xf32>
      %cst_86 = arith.constant dense<0.000000e+00> : vector<16xf32>
      %204 = vector.multi_reduction <add>, %201, %cst_86 [1] : vector<16x32xf32> to vector<16xf32>
      %205 = vector.shape_cast %204 : vector<16xf32> to vector<16x1xf32>
      %cst_87 = arith.constant 3.200000e+01 : f32
      %206 = vector.broadcast %cst_87 : f32 to vector<16x1xf32>
      %207 = arith.divf %205, %206 : vector<16x1xf32>
      %208 = vector.broadcast %207 : vector<16x1xf32> to vector<16x32xf32>
      %209 = arith.subf %201, %208 : vector<16x32xf32>
      %210 = arith.mulf %209, %209 : vector<16x32xf32>
      %cst_88 = arith.constant dense<0.000000e+00> : vector<16xf32>
      %211 = vector.multi_reduction <add>, %210, %cst_88 [1] : vector<16x32xf32> to vector<16xf32>
      %212 = vector.shape_cast %211 : vector<16xf32> to vector<16x1xf32>
      %cst_89 = arith.constant 3.200000e+01 : f32
      %213 = vector.broadcast %cst_89 : f32 to vector<16x1xf32>
      %214 = arith.divf %212, %213 : vector<16x1xf32>
      %215 = vector.broadcast %207 : vector<16x1xf32> to vector<16x32xf32>
      %216 = arith.subf %201, %215 : vector<16x32xf32>
      %cst_90 = arith.constant 9.99999996E-13 : f32
      %217 = vector.broadcast %cst_90 : f32 to vector<16x1xf32>
      %218 = arith.addf %214, %217 : vector<16x1xf32>
      %219 = math.rsqrt %218 : vector<16x1xf32>
      %220 = vector.broadcast %219 : vector<16x1xf32> to vector<16x32xf32>
      %221 = arith.mulf %216, %220 : vector<16x32xf32>
      %222 = vector.broadcast %202 : vector<1x32xf32> to vector<16x32xf32>
      %223 = arith.mulf %221, %222 : vector<16x32xf32>
      %224 = vector.broadcast %203 : vector<1x32xf32> to vector<16x32xf32>
      %225 = arith.addf %223, %224 : vector<16x32xf32>
      %c0_91 = arith.constant 0 : index
      %c0_92 = arith.constant 0 : index
      %226 = vector.load %arg17[%c0_91, %c0_92] : memref<16x32xf32, #tpu.memory_space<vmem>>, vector<16x32xf32>
      tpu.vector_store %arg17[%c0_91, %c0_92], %225 {strides = array<i32>} : memref<16x32xf32, #tpu.memory_space<vmem>>, vector<16x32xf32>,
    } else {
    }
    %c0 = arith.constant 0 : index
    %c0_1 = arith.constant 0 : index
    %3 = vector.load %arg17[%c0, %c0_1] : memref<16x32xf32, #tpu.memory_space<vmem>>, vector<16x32xf32>
    %c0_2 = arith.constant 0 : index
    %c0_3 = arith.constant 0 : index
    %c0_4 = arith.constant 0 : index
    %4 = vector.load %arg5[%c0_2, %c0_3, %c0_4] : memref<1x32x96xbf16, #tpu.memory_space<vmem>>, vector<1x32x96xbf16>
    %5 = vector.shape_cast %4 : vector<1x32x96xbf16> to vector<32x96xbf16>
    %6 = arith.truncf %3 : vector<16x32xf32> to vector<16x32xbf16>
    %cst = arith.constant dense<0.000000e+00> : vector<16x96xf32>
    %7 = tpu.matmul %6, %5, %cst {dimension_numbers = #tpu.dot_dimension_numbers<[1], [0], [0], [1], [0, 0, 1, 1], [], []>} : vector<16x32xbf16>, vector<32x96xbf16>, vector<16x96xf32> -> vector<16x96xf32>
    %c0_5 = arith.constant 0 : index
    %c0_6 = arith.constant 0 : index
    %c0_7 = arith.constant 0 : index
    %8 = vector.load %arg6[%c0_5, %c0_6, %c0_7] : memref<1x1x96xf32, #tpu.memory_space<vmem>>, vector<1x1x96xf32>
    %9 = vector.shape_cast %8 : vector<1x1x96xf32> to vector<1x96xf32>
    %10 = vector.broadcast %9 : vector<1x96xf32> to vector<16x96xf32>
    %11 = arith.addf %7, %10 : vector<16x96xf32>
    %12 = vector.shape_cast %11 : vector<16x96xf32> to vector<2x8x96xf32>
    %c0_8 = arith.constant 0 : index
    %c0_9 = arith.constant 0 : index
    %c0_10 = arith.constant 0 : index
    %13 = vector.load %arg4[%c0_8, %c0_9, %c0_10] : memref<2x1x8xf32, #tpu.memory_space<vmem>>, vector<2x1x8xf32>
    %14 = vector.shape_cast %13 : vector<2x1x8xf32> to vector<2x1x8xf32>
    %15 = vector.broadcast %14 : vector<2x1x8xf32> to vector<2x8x8xf32>
    %c0_11 = arith.constant 0 : index
    %c0_12 = arith.constant 0 : index
    %c0_13 = arith.constant 0 : index
    %c0_14 = arith.constant 0 : index
    %16 = vector.load %arg7[%c0_11, %c0_12, %c0_13, %c0_14] : memref<1x4x8x32xbf16, #tpu.memory_space<vmem>>, vector<1x4x8x32xbf16>
    %17 = vector.shape_cast %16 : vector<1x4x8x32xbf16> to vector<4x8x32xbf16>
    %18 = vector.extract_strided_slice %12 {offsets = [0, 0, 0], sizes = [2, 8, 8], strides = [1, 1, 1]} : vector<2x8x96xf32> to vector<2x8x8xf32>
    %19 = vector.extract_strided_slice %12 {offsets = [0, 0, 32], sizes = [2, 8, 8], strides = [1, 1, 1]} : vector<2x8x96xf32> to vector<2x8x8xf32>
    %20 = vector.extract_strided_slice %12 {offsets = [0, 0, 64], sizes = [2, 8, 8], strides = [1, 1, 1]} : vector<2x8x96xf32> to vector<2x8x8xf32>
    "tpu.trace_start"() <{level = 10 : i32, message = "bqd,bkd->bqk"}> : () -> ()
    %cst_15 = arith.constant dense<0.000000e+00> : vector<2x8x8xf32>
    %21 = tpu.matmul %18, %19, %cst_15 {dimension_numbers = #tpu.dot_dimension_numbers<[2], [2], [1], [1], [0, 0, 0, 1, 1, 1], [0], [0]>} : vector<2x8x8xf32>, vector<2x8x8xf32>, vector<2x8x8xf32> -> vector<2x8x8xf32>
    "tpu.trace_stop"() : () -> ()
    %22 = arith.addf %21, %15 : vector<2x8x8xf32>
    %cst_16 = arith.constant dense<0xFF800000> : vector<2x8xf32>
    %23 = vector.multi_reduction <maximumf>, %22, %cst_16 [2] : vector<2x8x8xf32> to vector<2x8xf32>
    %24 = vector.shape_cast %23 : vector<2x8xf32> to vector<2x8x1xf32>
    %25 = vector.broadcast %24 : vector<2x8x1xf32> to vector<2x8x8xf32>
    %26 = arith.subf %22, %25 : vector<2x8x8xf32>
    %27 = math.exp %26 : vector<2x8x8xf32>
    %cst_17 = arith.constant dense<0.000000e+00> : vector<2x8xf32>
    %28 = vector.multi_reduction <add>, %27, %cst_17 [2] : vector<2x8x8xf32> to vector<2x8xf32>
    %29 = vector.shape_cast %28 : vector<2x8xf32> to vector<2x8x1xf32>
    %30 = tpu.reciprocal %29 {approx = true} : vector<2x8x1xf32> -> vector<2x8x1xf32>
    %31 = vector.broadcast %30 : vector<2x8x1xf32> to vector<2x8x8xf32>
    %32 = arith.mulf %27, %31 : vector<2x8x8xf32>
    %33 = arith.truncf %32 : vector<2x8x8xf32> to vector<2x8x8xbf16>
    %34 = arith.truncf %20 : vector<2x8x8xf32> to vector<2x8x8xbf16>
    "tpu.trace_start"() <{level = 10 : i32, message = "bqk,bkd->bqd"}> : () -> ()
    %cst_18 = arith.constant dense<0.000000e+00> : vector<2x8x8xf32>
    %35 = tpu.matmul %33, %34, %cst_18 {dimension_numbers = #tpu.dot_dimension_numbers<[2], [1], [1], [2], [0, 0, 0, 1, 1, 2], [0], [0]>} : vector<2x8x8xbf16>, vector<2x8x8xbf16>, vector<2x8x8xf32> -> vector<2x8x8xf32>
    "tpu.trace_stop"() : () -> ()
    %36 = vector.shape_cast %35 : vector<2x8x8xf32> to vector<16x8xf32>
    %37 = arith.truncf %36 : vector<16x8xf32> to vector<16x8xbf16>
    %38 = vector.extract_strided_slice %17 {offsets = [0, 0, 0], sizes = [1, 8, 32], strides = [1, 1, 1]} : vector<4x8x32xbf16> to vector<1x8x32xbf16>
    %39 = vector.shape_cast %38 : vector<1x8x32xbf16> to vector<8x32xbf16>
    %cst_19 = arith.constant dense<0.000000e+00> : vector<16x32xf32>
    %40 = tpu.matmul %37, %39, %cst_19 {dimension_numbers = #tpu.dot_dimension_numbers<[1], [0], [0], [1], [0, 0, 1, 1], [], []>} : vector<16x8xbf16>, vector<8x32xbf16>, vector<16x32xf32> -> vector<16x32xf32>
    %41 = vector.extract_strided_slice %12 {offsets = [0, 0, 8], sizes = [2, 8, 8], strides = [1, 1, 1]} : vector<2x8x96xf32> to vector<2x8x8xf32>
    %42 = vector.extract_strided_slice %12 {offsets = [0, 0, 40], sizes = [2, 8, 8], strides = [1, 1, 1]} : vector<2x8x96xf32> to vector<2x8x8xf32>
    %43 = vector.extract_strided_slice %12 {offsets = [0, 0, 72], sizes = [2, 8, 8], strides = [1, 1, 1]} : vector<2x8x96xf32> to vector<2x8x8xf32>
    "tpu.trace_start"() <{level = 10 : i32, message = "bqd,bkd->bqk"}> : () -> ()
    %cst_20 = arith.constant dense<0.000000e+00> : vector<2x8x8xf32>
    %44 = tpu.matmul %41, %42, %cst_20 {dimension_numbers = #tpu.dot_dimension_numbers<[2], [2], [1], [1], [0, 0, 0, 1, 1, 1], [0], [0]>} : vector<2x8x8xf32>, vector<2x8x8xf32>, vector<2x8x8xf32> -> vector<2x8x8xf32>
    "tpu.trace_stop"() : () -> ()
    %45 = arith.addf %44, %15 : vector<2x8x8xf32>
    %cst_21 = arith.constant dense<0xFF800000> : vector<2x8xf32>
    %46 = vector.multi_reduction <maximumf>, %45, %cst_21 [2] : vector<2x8x8xf32> to vector<2x8xf32>
    %47 = vector.shape_cast %46 : vector<2x8xf32> to vector<2x8x1xf32>
    %48 = vector.broadcast %47 : vector<2x8x1xf32> to vector<2x8x8xf32>
    %49 = arith.subf %45, %48 : vector<2x8x8xf32>
    %50 = math.exp %49 : vector<2x8x8xf32>
    %cst_22 = arith.constant dense<0.000000e+00> : vector<2x8xf32>
    %51 = vector.multi_reduction <add>, %50, %cst_22 [2] : vector<2x8x8xf32> to vector<2x8xf32>
    %52 = vector.shape_cast %51 : vector<2x8xf32> to vector<2x8x1xf32>
    %53 = tpu.reciprocal %52 {approx = true} : vector<2x8x1xf32> -> vector<2x8x1xf32>
    %54 = vector.broadcast %53 : vector<2x8x1xf32> to vector<2x8x8xf32>
    %55 = arith.mulf %50, %54 : vector<2x8x8xf32>
    %56 = arith.truncf %55 : vector<2x8x8xf32> to vector<2x8x8xbf16>
    %57 = arith.truncf %43 : vector<2x8x8xf32> to vector<2x8x8xbf16>
    "tpu.trace_start"() <{level = 10 : i32, message = "bqk,bkd->bqd"}> : () -> ()
    %cst_23 = arith.constant dense<0.000000e+00> : vector<2x8x8xf32>
    %58 = tpu.matmul %56, %57, %cst_23 {dimension_numbers = #tpu.dot_dimension_numbers<[2], [1], [1], [2], [0, 0, 0, 1, 1, 2], [0], [0]>} : vector<2x8x8xbf16>, vector<2x8x8xbf16>, vector<2x8x8xf32> -> vector<2x8x8xf32>
    "tpu.trace_stop"() : () -> ()
    %59 = vector.shape_cast %58 : vector<2x8x8xf32> to vector<16x8xf32>
    %60 = arith.truncf %59 : vector<16x8xf32> to vector<16x8xbf16>
    %61 = vector.extract_strided_slice %17 {offsets = [1, 0, 0], sizes = [1, 8, 32], strides = [1, 1, 1]} : vector<4x8x32xbf16> to vector<1x8x32xbf16>
    %62 = vector.shape_cast %61 : vector<1x8x32xbf16> to vector<8x32xbf16>
    %cst_24 = arith.constant dense<0.000000e+00> : vector<16x32xf32>
    %63 = tpu.matmul %60, %62, %cst_24 {dimension_numbers = #tpu.dot_dimension_numbers<[1], [0], [0], [1], [0, 0, 1, 1], [], []>} : vector<16x8xbf16>, vector<8x32xbf16>, vector<16x32xf32> -> vector<16x32xf32>
    %64 = arith.addf %40, %63 : vector<16x32xf32>
    %65 = vector.extract_strided_slice %12 {offsets = [0, 0, 16], sizes = [2, 8, 8], strides = [1, 1, 1]} : vector<2x8x96xf32> to vector<2x8x8xf32>
    %66 = vector.extract_strided_slice %12 {offsets = [0, 0, 48], sizes = [2, 8, 8], strides = [1, 1, 1]} : vector<2x8x96xf32> to vector<2x8x8xf32>
    %67 = vector.extract_strided_slice %12 {offsets = [0, 0, 80], sizes = [2, 8, 8], strides = [1, 1, 1]} : vector<2x8x96xf32> to vector<2x8x8xf32>
    "tpu.trace_start"() <{level = 10 : i32, message = "bqd,bkd->bqk"}> : () -> ()
    %cst_25 = arith.constant dense<0.000000e+00> : vector<2x8x8xf32>
    %68 = tpu.matmul %65, %66, %cst_25 {dimension_numbers = #tpu.dot_dimension_numbers<[2], [2], [1], [1], [0, 0, 0, 1, 1, 1], [0], [0]>} : vector<2x8x8xf32>, vector<2x8x8xf32>, vector<2x8x8xf32> -> vector<2x8x8xf32>
    "tpu.trace_stop"() : () -> ()
    %69 = arith.addf %68, %15 : vector<2x8x8xf32>
    %cst_26 = arith.constant dense<0xFF800000> : vector<2x8xf32>
    %70 = vector.multi_reduction <maximumf>, %69, %cst_26 [2] : vector<2x8x8xf32> to vector<2x8xf32>
    %71 = vector.shape_cast %70 : vector<2x8xf32> to vector<2x8x1xf32>
    %72 = vector.broadcast %71 : vector<2x8x1xf32> to vector<2x8x8xf32>
    %73 = arith.subf %69, %72 : vector<2x8x8xf32>
    %74 = math.exp %73 : vector<2x8x8xf32>
    %cst_27 = arith.constant dense<0.000000e+00> : vector<2x8xf32>
    %75 = vector.multi_reduction <add>, %74, %cst_27 [2] : vector<2x8x8xf32> to vector<2x8xf32>
    %76 = vector.shape_cast %75 : vector<2x8xf32> to vector<2x8x1xf32>
    %77 = tpu.reciprocal %76 {approx = true} : vector<2x8x1xf32> -> vector<2x8x1xf32>
    %78 = vector.broadcast %77 : vector<2x8x1xf32> to vector<2x8x8xf32>
    %79 = arith.mulf %74, %78 : vector<2x8x8xf32>
    %80 = arith.truncf %79 : vector<2x8x8xf32> to vector<2x8x8xbf16>
    %81 = arith.truncf %67 : vector<2x8x8xf32> to vector<2x8x8xbf16>
    "tpu.trace_start"() <{level = 10 : i32, message = "bqk,bkd->bqd"}> : () -> ()
    %cst_28 = arith.constant dense<0.000000e+00> : vector<2x8x8xf32>
    %82 = tpu.matmul %80, %81, %cst_28 {dimension_numbers = #tpu.dot_dimension_numbers<[2], [1], [1], [2], [0, 0, 0, 1, 1, 2], [0], [0]>} : vector<2x8x8xbf16>, vector<2x8x8xbf16>, vector<2x8x8xf32> -> vector<2x8x8xf32>
    "tpu.trace_stop"() : () -> ()
    %83 = vector.shape_cast %82 : vector<2x8x8xf32> to vector<16x8xf32>
    %84 = arith.truncf %83 : vector<16x8xf32> to vector<16x8xbf16>
    %85 = vector.extract_strided_slice %17 {offsets = [2, 0, 0], sizes = [1, 8, 32], strides = [1, 1, 1]} : vector<4x8x32xbf16> to vector<1x8x32xbf16>
    %86 = vector.shape_cast %85 : vector<1x8x32xbf16> to vector<8x32xbf16>
    %cst_29 = arith.constant dense<0.000000e+00> : vector<16x32xf32>
    %87 = tpu.matmul %84, %86, %cst_29 {dimension_numbers = #tpu.dot_dimension_numbers<[1], [0], [0], [1], [0, 0, 1, 1], [], []>} : vector<16x8xbf16>, vector<8x32xbf16>, vector<16x32xf32> -> vector<16x32xf32>
    %88 = arith.addf %64, %87 : vector<16x32xf32>
    %89 = vector.extract_strided_slice %12 {offsets = [0, 0, 24], sizes = [2, 8, 8], strides = [1, 1, 1]} : vector<2x8x96xf32> to vector<2x8x8xf32>
    %90 = vector.extract_strided_slice %12 {offsets = [0, 0, 56], sizes = [2, 8, 8], strides = [1, 1, 1]} : vector<2x8x96xf32> to vector<2x8x8xf32>
    %91 = vector.extract_strided_slice %12 {offsets = [0, 0, 88], sizes = [2, 8, 8], strides = [1, 1, 1]} : vector<2x8x96xf32> to vector<2x8x8xf32>
    "tpu.trace_start"() <{level = 10 : i32, message = "bqd,bkd->bqk"}> : () -> ()
    %cst_30 = arith.constant dense<0.000000e+00> : vector<2x8x8xf32>
    %92 = tpu.matmul %89, %90, %cst_30 {dimension_numbers = #tpu.dot_dimension_numbers<[2], [2], [1], [1], [0, 0, 0, 1, 1, 1], [0], [0]>} : vector<2x8x8xf32>, vector<2x8x8xf32>, vector<2x8x8xf32> -> vector<2x8x8xf32>
    "tpu.trace_stop"() : () -> ()
    %93 = arith.addf %92, %15 : vector<2x8x8xf32>
    %cst_31 = arith.constant dense<0xFF800000> : vector<2x8xf32>
    %94 = vector.multi_reduction <maximumf>, %93, %cst_31 [2] : vector<2x8x8xf32> to vector<2x8xf32>
    %95 = vector.shape_cast %94 : vector<2x8xf32> to vector<2x8x1xf32>
    %96 = vector.broadcast %95 : vector<2x8x1xf32> to vector<2x8x8xf32>
    %97 = arith.subf %93, %96 : vector<2x8x8xf32>
    %98 = math.exp %97 : vector<2x8x8xf32>
    %cst_32 = arith.constant dense<0.000000e+00> : vector<2x8xf32>
    %99 = vector.multi_reduction <add>, %98, %cst_32 [2] : vector<2x8x8xf32> to vector<2x8xf32>
    %100 = vector.shape_cast %99 : vector<2x8xf32> to vector<2x8x1xf32>
    %101 = tpu.reciprocal %100 {approx = true} : vector<2x8x1xf32> -> vector<2x8x1xf32>
    %102 = vector.broadcast %101 : vector<2x8x1xf32> to vector<2x8x8xf32>
    %103 = arith.mulf %98, %102 : vector<2x8x8xf32>
    %104 = arith.truncf %103 : vector<2x8x8xf32> to vector<2x8x8xbf16>
    %105 = arith.truncf %91 : vector<2x8x8xf32> to vector<2x8x8xbf16>
    "tpu.trace_start"() <{level = 10 : i32, message = "bqk,bkd->bqd"}> : () -> ()
    %cst_33 = arith.constant dense<0.000000e+00> : vector<2x8x8xf32>
    %106 = tpu.matmul %104, %105, %cst_33 {dimension_numbers = #tpu.dot_dimension_numbers<[2], [1], [1], [2], [0, 0, 0, 1, 1, 2], [0], [0]>} : vector<2x8x8xbf16>, vector<2x8x8xbf16>, vector<2x8x8xf32> -> vector<2x8x8xf32>
    "tpu.trace_stop"() : () -> ()
    %107 = vector.shape_cast %106 : vector<2x8x8xf32> to vector<16x8xf32>
    %108 = arith.truncf %107 : vector<16x8xf32> to vector<16x8xbf16>
    %109 = vector.extract_strided_slice %17 {offsets = [3, 0, 0], sizes = [1, 8, 32], strides = [1, 1, 1]} : vector<4x8x32xbf16> to vector<1x8x32xbf16>
    %110 = vector.shape_cast %109 : vector<1x8x32xbf16> to vector<8x32xbf16>
    %cst_34 = arith.constant dense<0.000000e+00> : vector<16x32xf32>
    %111 = tpu.matmul %108, %110, %cst_34 {dimension_numbers = #tpu.dot_dimension_numbers<[1], [0], [0], [1], [0, 0, 1, 1], [], []>} : vector<16x8xbf16>, vector<8x32xbf16>, vector<16x32xf32> -> vector<16x32xf32>
    %112 = arith.addf %88, %111 : vector<16x32xf32>
    %c0_35 = arith.constant 0 : index
    %c0_36 = arith.constant 0 : index
    %c0_37 = arith.constant 0 : index
    %113 = vector.load %arg8[%c0_35, %c0_36, %c0_37] : memref<1x1x32xf32, #tpu.memory_space<vmem>>, vector<1x1x32xf32>
    %114 = vector.shape_cast %113 : vector<1x1x32xf32> to vector<1x32xf32>
    %115 = vector.broadcast %114 : vector<1x32xf32> to vector<16x32xf32>
    %116 = arith.addf %112, %115 : vector<16x32xf32>
    %117 = arith.addf %116, %3 : vector<16x32xf32>
    %c0_38 = arith.constant 0 : index
    %c0_39 = arith.constant 0 : index
    %c0_40 = arith.constant 0 : index
    %118 = vector.load %arg9[%c0_38, %c0_39, %c0_40] : memref<1x1x32xf32, #tpu.memory_space<vmem>>, vector<1x1x32xf32>
    %119 = vector.shape_cast %118 : vector<1x1x32xf32> to vector<1x32xf32>
    %c0_41 = arith.constant 0 : index
    %c0_42 = arith.constant 0 : index
    %c0_43 = arith.constant 0 : index
    %120 = vector.load %arg10[%c0_41, %c0_42, %c0_43] : memref<1x1x32xf32, #tpu.memory_space<vmem>>, vector<1x1x32xf32>
    %121 = vector.shape_cast %120 : vector<1x1x32xf32> to vector<1x32xf32>
    %cst_44 = arith.constant dense<0.000000e+00> : vector<16xf32>
    %122 = vector.multi_reduction <add>, %117, %cst_44 [1] : vector<16x32xf32> to vector<16xf32>
    %123 = vector.shape_cast %122 : vector<16xf32> to vector<16x1xf32>
    %cst_45 = arith.constant 3.200000e+01 : f32
    %124 = vector.broadcast %cst_45 : f32 to vector<16x1xf32>
    %125 = arith.divf %123, %124 : vector<16x1xf32>
    %126 = vector.broadcast %125 : vector<16x1xf32> to vector<16x32xf32>
    %127 = arith.subf %117, %126 : vector<16x32xf32>
    %128 = arith.mulf %127, %127 : vector<16x32xf32>
    %cst_46 = arith.constant dense<0.000000e+00> : vector<16xf32>
    %129 = vector.multi_reduction <add>, %128, %cst_46 [1] : vector<16x32xf32> to vector<16xf32>
    %130 = vector.shape_cast %129 : vector<16xf32> to vector<16x1xf32>
    %cst_47 = arith.constant 3.200000e+01 : f32
    %131 = vector.broadcast %cst_47 : f32 to vector<16x1xf32>
    %132 = arith.divf %130, %131 : vector<16x1xf32>
    %133 = vector.broadcast %125 : vector<16x1xf32> to vector<16x32xf32>
    %134 = arith.subf %117, %133 : vector<16x32xf32>
    %cst_48 = arith.constant 9.99999996E-13 : f32
    %135 = vector.broadcast %cst_48 : f32 to vector<16x1xf32>
    %136 = arith.addf %132, %135 : vector<16x1xf32>
    %137 = math.rsqrt %136 : vector<16x1xf32>
    %138 = vector.broadcast %137 : vector<16x1xf32> to vector<16x32xf32>
    %139 = arith.mulf %134, %138 : vector<16x32xf32>
    %140 = vector.broadcast %119 : vector<1x32xf32> to vector<16x32xf32>
    %141 = arith.mulf %139, %140 : vector<16x32xf32>
    %142 = vector.broadcast %121 : vector<1x32xf32> to vector<16x32xf32>
    %143 = arith.addf %141, %142 : vector<16x32xf32>
    %c0_49 = arith.constant 0 : index
    %c0_50 = arith.constant 0 : index
    %c0_51 = arith.constant 0 : index
    %144 = vector.load %arg11[%c0_49, %c0_50, %c0_51] : memref<1x32x64xbf16, #tpu.memory_space<vmem>>, vector<1x32x64xbf16>
    %145 = vector.shape_cast %144 : vector<1x32x64xbf16> to vector<32x64xbf16>
    %146 = arith.truncf %143 : vector<16x32xf32> to vector<16x32xbf16>
    %cst_52 = arith.constant dense<0.000000e+00> : vector<16x64xf32>
    %147 = tpu.matmul %146, %145, %cst_52 {dimension_numbers = #tpu.dot_dimension_numbers<[1], [0], [0], [1], [0, 0, 1, 1], [], []>} : vector<16x32xbf16>, vector<32x64xbf16>, vector<16x64xf32> -> vector<16x64xf32>
    %c0_53 = arith.constant 0 : index
    %c0_54 = arith.constant 0 : index
    %c0_55 = arith.constant 0 : index
    %148 = vector.load %arg12[%c0_53, %c0_54, %c0_55] : memref<1x1x64xf32, #tpu.memory_space<vmem>>, vector<1x1x64xf32>
    %149 = vector.shape_cast %148 : vector<1x1x64xf32> to vector<1x64xf32>
    %150 = vector.broadcast %149 : vector<1x64xf32> to vector<16x64xf32>
    %151 = arith.addf %147, %150 : vector<16x64xf32>
    %152 = arith.mulf %151, %151 : vector<16x64xf32>
    %153 = arith.mulf %151, %152 : vector<16x64xf32>
    %cst_56 = arith.constant 4.471500e-02 : f32
    %154 = vector.broadcast %cst_56 : f32 to vector<16x64xf32>
    %155 = arith.mulf %154, %153 : vector<16x64xf32>
    %156 = arith.addf %151, %155 : vector<16x64xf32>
    %cst_57 = arith.constant 0.797884583 : f32
    %157 = vector.broadcast %cst_57 : f32 to vector<16x64xf32>
    %158 = arith.mulf %157, %156 : vector<16x64xf32>
    %159 = math.tanh %158 : vector<16x64xf32>
    %cst_58 = arith.constant 1.000000e+00 : f32
    %160 = vector.broadcast %cst_58 : f32 to vector<16x64xf32>
    %161 = arith.addf %160, %159 : vector<16x64xf32>
    %cst_59 = arith.constant 5.000000e-01 : f32
    %162 = vector.broadcast %cst_59 : f32 to vector<16x64xf32>
    %163 = arith.mulf %162, %161 : vector<16x64xf32>
    %164 = arith.mulf %151, %163 : vector<16x64xf32>
    %c0_60 = arith.constant 0 : index
    %c0_61 = arith.constant 0 : index
    %c0_62 = arith.constant 0 : index
    %165 = vector.load %arg13[%c0_60, %c0_61, %c0_62] : memref<1x64x32xbf16, #tpu.memory_space<vmem>>, vector<1x64x32xbf16>
    %166 = vector.shape_cast %165 : vector<1x64x32xbf16> to vector<64x32xbf16>
    %167 = arith.truncf %164 : vector<16x64xf32> to vector<16x64xbf16>
    %cst_63 = arith.constant dense<0.000000e+00> : vector<16x32xf32>
    %168 = tpu.matmul %167, %166, %cst_63 {dimension_numbers = #tpu.dot_dimension_numbers<[1], [0], [0], [1], [0, 0, 1, 1], [], []>} : vector<16x64xbf16>, vector<64x32xbf16>, vector<16x32xf32> -> vector<16x32xf32>
    %c0_64 = arith.constant 0 : index
    %c0_65 = arith.constant 0 : index
    %c0_66 = arith.constant 0 : index
    %169 = vector.load %arg14[%c0_64, %c0_65, %c0_66] : memref<1x1x32xf32, #tpu.memory_space<vmem>>, vector<1x1x32xf32>
    %170 = vector.shape_cast %169 : vector<1x1x32xf32> to vector<1x32xf32>
    %171 = vector.broadcast %170 : vector<1x32xf32> to vector<16x32xf32>
    %172 = arith.addf %168, %171 : vector<16x32xf32>
    %173 = arith.addf %172, %143 : vector<16x32xf32>
    %c0_67 = arith.constant 0 : index
    %c0_68 = arith.constant 0 : index
    %c0_69 = arith.constant 0 : index
    %174 = vector.load %arg15[%c0_67, %c0_68, %c0_69] : memref<1x1x32xf32, #tpu.memory_space<vmem>>, vector<1x1x32xf32>
    %175 = vector.shape_cast %174 : vector<1x1x32xf32> to vector<1x32xf32>
    %c0_70 = arith.constant 0 : index
    %c0_71 = arith.constant 0 : index
    %c0_72 = arith.constant 0 : index
    %176 = vector.load %arg16[%c0_70, %c0_71, %c0_72] : memref<1x1x32xf32, #tpu.memory_space<vmem>>, vector<1x1x32xf32>
    %177 = vector.shape_cast %176 : vector<1x1x32xf32> to vector<1x32xf32>
    %cst_73 = arith.constant dense<0.000000e+00> : vector<16xf32>
    %178 = vector.multi_reduction <add>, %173, %cst_73 [1] : vector<16x32xf32> to vector<16xf32>
    %179 = vector.shape_cast %178 : vector<16xf32> to vector<16x1xf32>
    %cst_74 = arith.constant 3.200000e+01 : f32
    %180 = vector.broadcast %cst_74 : f32 to vector<16x1xf32>
    %181 = arith.divf %179, %180 : vector<16x1xf32>
    %182 = vector.broadcast %181 : vector<16x1xf32> to vector<16x32xf32>
    %183 = arith.subf %173, %182 : vector<16x32xf32>
    %184 = arith.mulf %183, %183 : vector<16x32xf32>
    %cst_75 = arith.constant dense<0.000000e+00> : vector<16xf32>
    %185 = vector.multi_reduction <add>, %184, %cst_75 [1] : vector<16x32xf32> to vector<16xf32>
    %186 = vector.shape_cast %185 : vector<16xf32> to vector<16x1xf32>
    %cst_76 = arith.constant 3.200000e+01 : f32
    %187 = vector.broadcast %cst_76 : f32 to vector<16x1xf32>
    %188 = arith.divf %186, %187 : vector<16x1xf32>
    %189 = vector.broadcast %181 : vector<16x1xf32> to vector<16x32xf32>
    %190 = arith.subf %173, %189 : vector<16x32xf32>
    %cst_77 = arith.constant 9.99999996E-13 : f32
    %191 = vector.broadcast %cst_77 : f32 to vector<16x1xf32>
    %192 = arith.addf %188, %191 : vector<16x1xf32>
    %193 = math.rsqrt %192 : vector<16x1xf32>
    %194 = vector.broadcast %193 : vector<16x1xf32> to vector<16x32xf32>
    %195 = arith.mulf %190, %194 : vector<16x32xf32>
    %196 = vector.broadcast %175 : vector<1x32xf32> to vector<16x32xf32>
    %197 = arith.mulf %195, %196 : vector<16x32xf32>
    %198 = vector.broadcast %177 : vector<1x32xf32> to vector<16x32xf32>
    %199 = arith.addf %197, %198 : vector<16x32xf32>
    %c0_78 = arith.constant 0 : index
    %c0_79 = arith.constant 0 : index
    %200 = vector.load %arg17[%c0_78, %c0_79] : memref<16x32xf32, #tpu.memory_space<vmem>>, vector<16x32xf32>
    tpu.vector_store %arg17[%c0_78, %c0_79], %199 {strides = array<i32>} : memref<16x32xf32, #tpu.memory_space<vmem>>, vector<16x32xf32>,
    return
  }
  func.func @transform_0(%arg0: i32) -> (i32, i32) {
    %c0_i32 = arith.constant 0 : i32
    %c0_i32_0 = arith.constant 0 : i32
    %c0_i32_1 = arith.constant 0 : i32
    return %c0_i32, %c0_i32_0 : i32, i32
  }
  func.func @transform_1(%arg0: i32) -> (i32, i32) {
    %c0_i32 = arith.constant 0 : i32
    %c0_i32_0 = arith.constant 0 : i32
    %c0_i32_1 = arith.constant 0 : i32
    return %c0_i32, %c0_i32_0 : i32, i32
  }
  func.func @transform_2(%arg0: i32) -> (i32, i32) {
    %c0_i32 = arith.constant 0 : i32
    %c0_i32_0 = arith.constant 0 : i32
    %c0_i32_1 = arith.constant 0 : i32
    return %c0_i32, %c0_i32_0 : i32, i32
  }
  func.func @transform_3(%arg0: i32) -> (i32, i32, i32) {
    %c0_i32 = arith.constant 0 : i32
    %c0_i32_0 = arith.constant 0 : i32
    %c0_i32_1 = arith.constant 0 : i32
    %c0_i32_2 = arith.constant 0 : i32
    return %c0_i32, %c0_i32_0, %c0_i32_1 : i32, i32, i32
  }
  func.func @transform_4(%arg0: i32) -> (i32, i32, i32) {
    %c0_i32 = arith.constant 0 : i32
    %c0_i32_0 = arith.constant 0 : i32
    %c0_i32_1 = arith.constant 0 : i32
    return %arg0, %c0_i32, %c0_i32_0 : i32, i32, i32
  }
  func.func @transform_5(%arg0: i32) -> (i32, i32, i32) {
    %c0_i32 = arith.constant 0 : i32
    %c0_i32_0 = arith.constant 0 : i32
    %c0_i32_1 = arith.constant 0 : i32
    return %arg0, %c0_i32, %c0_i32_0 : i32, i32, i32
  }
  func.func @transform_6(%arg0: i32) -> (i32, i32, i32, i32) {
    %c0_i32 = arith.constant 0 : i32
    %c0_i32_0 = arith.constant 0 : i32
    %c0_i32_1 = arith.constant 0 : i32
    %c0_i32_2 = arith.constant 0 : i32
    return %arg0, %c0_i32, %c0_i32_0, %c0_i32_1 : i32, i32, i32, i32
  }
  func.func @transform_7(%arg0: i32) -> (i32, i32, i32) {
    %c0_i32 = arith.constant 0 : i32
    %c0_i32_0 = arith.constant 0 : i32
    %c0_i32_1 = arith.constant 0 : i32
    return %arg0, %c0_i32, %c0_i32_0 : i32, i32, i32
  }
  func.func @transform_8(%arg0: i32) -> (i32, i32, i32) {
    %c0_i32 = arith.constant 0 : i32
    %c0_i32_0 = arith.constant 0 : i32
    %c0_i32_1 = arith.constant 0 : i32
    return %arg0, %c0_i32, %c0_i32_0 : i32, i32, i32
  }
  func.func @transform_9(%arg0: i32) -> (i32, i32, i32) {
    %c0_i32 = arith.constant 0 : i32
    %c0_i32_0 = arith.constant 0 : i32
    %c0_i32_1 = arith.constant 0 : i32
    return %arg0, %c0_i32, %c0_i32_0 : i32, i32, i32
  }
  func.func @transform_10(%arg0: i32) -> (i32, i32, i32) {
    %c0_i32 = arith.constant 0 : i32
    %c0_i32_0 = arith.constant 0 : i32
    %c0_i32_1 = arith.constant 0 : i32
    return %arg0, %c0_i32, %c0_i32_0 : i32, i32, i32
  }
  func.func @transform_11(%arg0: i32) -> (i32, i32, i32) {
    %c0_i32 = arith.constant 0 : i32
    %c0_i32_0 = arith.constant 0 : i32
    %c0_i32_1 = arith.constant 0 : i32
    return %arg0, %c0_i32, %c0_i32_0 : i32, i32, i32
  }
  func.func @transform_12(%arg0: i32) -> (i32, i32, i32) {
    %c0_i32 = arith.constant 0 : i32
    %c0_i32_0 = arith.constant 0 : i32
    %c0_i32_1 = arith.constant 0 : i32
    return %arg0, %c0_i32, %c0_i32_0 : i32, i32, i32
  }
  func.func @transform_13(%arg0: i32) -> (i32, i32, i32) {
    %c0_i32 = arith.constant 0 : i32
    %c0_i32_0 = arith.constant 0 : i32
    %c0_i32_1 = arith.constant 0 : i32
    return %arg0, %c0_i32, %c0_i32_0 : i32, i32, i32
  }
  func.func @transform_14(%arg0: i32) -> (i32, i32, i32) {
    %c0_i32 = arith.constant 0 : i32
    %c0_i32_0 = arith.constant 0 : i32
    %c0_i32_1 = arith.constant 0 : i32
    return %arg0, %c0_i32, %c0_i32_0 : i32, i32, i32
  }
  func.func @transform_15(%arg0: i32) -> (i32, i32, i32) {
    %c0_i32 = arith.constant 0 : i32
    %c0_i32_0 = arith.constant 0 : i32
    %c0_i32_1 = arith.constant 0 : i32
    return %arg0, %c0_i32, %c0_i32_0 : i32, i32, i32
  }
  func.func @transform_16(%arg0: i32) -> (i32, i32) {
    %c0_i32 = arith.constant 0 : i32
    %c0_i32_0 = arith.constant 0 : i32
    %c0_i32_1 = arith.constant 0 : i32
    return %c0_i32, %c0_i32_0 : i32, i32
  }
}

</mosaic_0001>

<bundles_post_ra>
// kernel: tpu_custom_call.1
= control target key start
LH: loop header
LB: loop body
LE: loop exit
PB: predicated region body
PF: predicated region fallthrough
CT: control target
= control target key end

     0   :  { %s3676_s0 = inlined_call_operand.hbm [shape: f32[16,32], index: 0, kind: input, shape index: {}]   ;;  %s3677_s1 = inlined_call_operand.hbm [shape: f32[1,32], index: 1, kind: input, shape index: {}]   ;;  %s3678_s2 = inlined_call_operand.hbm [shape: f32[1,32], index: 2, kind: input, shape index: {}]   ;;  %s3679_s3 = inlined_call_operand.vmem [shape: f32[2,1,8], index: 3, kind: input, shape index: {}]   ;;  %s3680_s4 = inlined_call_operand.vmem [shape: bf16[2,32,96], index: 4, kind: input, shape index: {}]   ;;  %s3681_s5 = inlined_call_operand.vmem [shape: f32[2,1,96], index: 5, kind: input, shape index: {}]   ;;  %s3682_s6 = inlined_call_operand.vmem [shape: bf16[2,4,8,32], index: 6, kind: input, shape index: {}]   ;;  %s3683_s7 = inlined_call_operand.vmem [shape: f32[2,1,32], index: 7, kind: input, shape index: {}]   ;;  %s3684_s8 = inlined_call_operand.vmem [shape: f32[2,1,32], index: 8, kind: input, shape index: {}]   ;;  %s3685_s9 = inlined_call_operand.vmem [shape: f32[2,1,32], index: 9, kind: input, shape index: {}]   ;;  %s3686_s10 = inlined_call_operand.vmem [shape: bf16[2,32,64], index: 10, kind: input, shape index: {}]   ;;  %s3687_s11 = inlined_call_operand.vmem [shape: f32[2,1,64], index: 11, kind: input, shape index: {}]   ;;  %s3688_s12 = inlined_call_operand.vmem [shape: bf16[2,64,32], index: 12, kind: input, shape index: {}]   ;;  %s3689_s13 = inlined_call_operand.vmem [shape: f32[2,1,32], index: 13, kind: input, shape index: {}]   ;;  %s3690_s14 = inlined_call_operand.vmem [shape: f32[2,1,32], index: 14, kind: input, shape index: {}]   ;;  %s3691_s15 = inlined_call_operand.vmem [shape: f32[2,1,32], index: 15, kind: input, shape index: {}]   ;;  %s3692_s16 = inlined_call_operand.hbm [shape: f32[16,32], index: 16, kind: output, shape index: {}]  }
   0x1   :  { %3697 = sst [smem:[#allocation14_spill]] %s3676_s0 }
   0x2   :  { %3698 = sst [smem:[#allocation15_spill]] %s3677_s1 }
   0x3   :  { %3699 = sst [smem:[#allocation16_spill]] %s3678_s2 }
   0x4   :  { %3700 = sst [smem:[#allocation17_spill]] %s3680_s4 }
   0x5   :  { %3701 = sst [smem:[#allocation18_spill]] %s3682_s6 }
   0x6   :  { %3702 = sst [smem:[#allocation19_spill]] %s3692_s16 }
   0x7   :  { %21 = vsyncpa [#allocation3], 0 }
   0x8   :  { %22 = vsyncpa [#allocation6], 0 }
   0x9   :  { %23 = vsyncpa [#allocation4], 0  ;;  %s3246_s21 = smov 0  }
   0xa LB: > { %3703 = sst [smem:[#allocation12_spill]] %s3138_s21  ;;  %s3140_s22 = smov [#allocation5]   ;;  %s3138_s21 = sphi %s3246_s21, %s29_s21  }
   0xb   : > { %s477_s23 = sshll.u32 %s3140_s22, 4  ;;  %s3252_s24 = sadd.s32 4294967295, %s3138_s21   ;;  %s478_s23 = int_to_ptr.vmem [resolvable:$true] %s477_s23 }
   0xc   : > { %p2631_p0 = scmp.ge.s32.totalorder %s3138_s21, 1  ;;  %p451_p1 = scmp.lt.s32.totalorder %s3138_s21, 3 }
   0xd   : > { %p3693_p3 = scmp.eq.s32.totalorder %s3252_s24, 0  ;;  %s3141_s26 = smov [#allocation2]  }
   0xe   : > { %p3258_p4 = pnand %p2631_p0, %p451_p1  ;;  %s463_s27 = sshll.u32 %s3141_s26, 4  ;;  %s464_s27 = int_to_ptr.vmem [resolvable:$true] %s463_s27 }
   0xf   : > { %s3142_s29 = smov [#allocation7]   ;;  %s3029_s0 = scalar_lea.vmem %s478_s23, 16 }
  0x10   : > { %s3704_s25 = scalar_select %p3258_p4, 1, 0 }
  0x11   : > { %p2915_p5 = pneg %p3258_p4  ;;  %s488_s30 = sshll.u32 %s3142_s29, 4  ;;  %s3270_s30 = int_to_ptr.vmem [resolvable:$true] %s488_s30 }
  0x12   : > { %p3030_p8 = scmp.ne.s32.totalorder %s478_s23, %s3029_s0  ;;  %s3036_s17 = scalar_lea.vmem %s478_s23, 32 }
  0x13   : > { %p3266_p6 = pnand %p3693_p3, %p2915_p5  ;;  %p3037_p11 = scmp.lt.s32.totalorder %s478_s23, %s478_s23 }
  0x14   : > { %p3038_p12 = scmp.lt.s32.totalorder %s3036_s17, %s3029_s0 }
  0x15   : > { %p3020_p7 = pneg %p3266_p6 }
  0x16   : > { %p3039_p13 = por %p3038_p12, %p3037_p11 }
  0x17   : > { %p3032_p9 = pnand %p3030_p8, %p3020_p7 }
  0x19   : > { %p3033_p10 = pneg %p3032_p9 }
  0x1b   : > { %p3040_p0 = pnand %p3039_p13, %p3033_p10 }
  0x1d   : > { %3043 = shalt.err (!%p3040_p0)
}
  0x1e   : > { %s3706_s1 = sld [smem:[#allocation15_spill]]  ;;  %s3055_s20 = scalar_lea.vmem %s464_s27, 256 }
  0x1f   : > { %p3056_p1 = scmp.ne.s32.totalorder %s464_s27, %s3055_s20  ;;  %p3063_p9 = scmp.lt.s32.totalorder %s464_s27, %s464_s27 }
  0x20   : > { %p3064_p2 = scmp.lt.s32.totalorder %s3055_s20, %s3055_s20 }
  0x21   : > { %p3058_p5 = pnand %p3056_p1, %p3020_p7 }
  0x22   : > { %p3065_p3 = por %p3064_p2, %p3063_p9 }
  0x23   : > { %p3059_p8 = pneg %p3058_p5 }
  0x24   : > { %2921 = dma.hbm_to_vmem [thread:$0]  (!%p3266_p6), %s3706_s1, 16, %s478_s23, [#allocation6]  }
  0x25   : > { %p3066_p4 = pnand %p3065_p3, %p3059_p8 }
  0x27   : > { %3069 = shalt.err (!%p3066_p4)
}
  0x28   : > { %s3143_s22 = smov 128   ;;  %s3144_s26 = smov 8  }
  0x29   : > { %s3707_s0 = sld [smem:[#allocation14_spill]]  ;;  %s3081_s17 = scalar_lea.vmem %s3270_s30, 16 }
  0x2a   : > { %p3082_p10 = scmp.ne.s32.totalorder %s3270_s30, %s3081_s17  ;;  %s3088_s18 = scalar_lea.vmem %s3270_s30, 32 }
  0x2b   : > { %p3089_p4 = scmp.lt.s32.totalorder %s3270_s30, %s3270_s30  ;;  %p3090_p11 = scmp.lt.s32.totalorder %s3088_s18, %s3081_s17 }
  0x2c   : > { %p3084_p2 = pnand %p3082_p10, %p3020_p7 }
  0x2d   : > { %p3091_p12 = por %p3090_p11, %p3089_p4 }
  0x2e   : > { %p3085_p3 = pneg %p3084_p2 }
  0x2f   : > { %2918 = dma.hbm_to_vmem [thread:$0]  (!%p3266_p6), %s3707_s0, 256, %s464_s27, [#allocation3], %s3143_s22, %s3143_s22, %s3144_s26  }
  0x30   : > { %p3092_p13 = pnand %p3091_p12, %p3085_p3 }
  0x32   : > { %3095 = shalt.err (!%p3092_p13)
}
  0x33   : > { %s3708_s2 = sld [smem:[#allocation16_spill]]  ;;  %p3709_p0 = scmp.ne.s32.totalorder %s3704_s25, 0 }
  0x35   : > { %584 = sbr.rel (%p3709_p0) target bundleno = 4251 (0x109b), region = 84 }
  0x39   : > { %2924 = dma.hbm_to_vmem [thread:$0]  (!%p3266_p6), %s3708_s2, 16, %s3270_s30, [#allocation6]  }
  0x3a   : > { %p3710_p7 = scmp.eq.s32.totalorder %s3252_s24, 0 }
  0x3c   : > { %3125 = dma.done.wait (%p3710_p7), [#allocation3], 256   ;;  %p3711_p1 = pmov %p3710_p7 }
  0x3e   : > { %3127 = vsyncadd (%p3711_p1), [#allocation3], 4294967040  ;;  %p3712_p5 = pmov %p3711_p1 }
  0x3f   : > { %p3713_p8 = pmov %p3711_p1 }
  0x40   : > { %3129 = dma.done.wait (%p3712_p5), [#allocation6], 32  }
  0x41   : > { %3131 = vsyncadd (%p3713_p8), [#allocation6], 4294967264  ;;  %p676_p9 = scmp.lt.s32.totalorder %s3252_s24, 1  ;;  %s3714_s4 = sld [smem:[#allocation17_spill]] }
  0x42   : > { %s3715_s6 = sld [smem:[#allocation18_spill]]  ;;  %p3717_p6 = scmp.ne.s32.totalorder %s3252_s24, 0 }
  0x43   : > { %s3316_s27 = scalar_select %p676_p9, %s3252_s24, 1 }
  0x45   : > { %s2704_s25 = sshll.u32 %s3316_s27, 4  ;;  %s713_s28 = scalar_lea.vmem %s3689_s13, %s3316_s27 }
  0x46   : > { %s716_s26 = scalar_lea.vmem %s3690_s14, %s3316_s27  ;;  %s719_s16 = scalar_lea.vmem %s3691_s15, %s3316_s27 }
  0x47   : > { %s3326_s29 = scalar_lea.vmem %s3714_s4, %s2704_s25  ;;  %s3348_s4 = scalar_lea.vmem %s3686_s10, %s2704_s25 }
  0x48   : > { %s3331_s18 = scalar_lea.vmem %s3715_s6, %s2704_s25  ;;  %s705_s6 = scalar_lea.vmem %s3687_s11, %s3316_s27 }
  0x49   : > { %3716 = sst [smem:[#allocation13_spill]] %s3331_s18  ;;  %s2707_s18 = sshll.u32 %s3316_s27, 5 }
  0x4a   : > { %s3358_s1 = scalar_lea.vmem %s3688_s12, %s2707_s18  ;;  %724 = sbr.rel (%p3717_p6) target bundleno = 393 (0x189), region = 100 }
  0x4f   : > { %v725_v0 = vld [vmem:[#allocation2] sm:$0xff]  ;;  %vm729_vm0 = vcmask 261120   ;;  %v726_v1 = vld [vmem:[#allocation2 + $0x8] sm:$0xff]  ;;  %v2649_v21 = vld [vmem:[#allocation5] ss:$0 sm:$0xff] }
  0x50   : > { %v730_v2 = vsel %vm729_vm0, %v725_v0, 0.0  ;;  %v733_v3 = vsel %vm729_vm0, %v726_v1, 0.0  ;;  %v2650_v23 = vld [vmem:[#allocation7] ss:$0 sm:$0xff] }
  0x51   : > { %731 = vadd.xlane.f32.xlu0 %v730_v2 }
  0x55   : > { %734 = vadd.xlane.f32.xlu0 %v733_v3 }
  0xda   : > { %v732_v4 = vpop.xlane.xlu0 %731 }
  0xdb   : > { %v737_v5 = vmul.f32 0.03125, %v732_v4 }
  0xdd   : > { %v739_v6 = vsub.f32 %v725_v0, %v737_v5 }
  0xde   : > { %v735_v7 = vpop.xlane.xlu0 %734 }
  0xdf   : > { %v738_v8 = vmul.f32 0.03125, %v735_v7  ;;  %v741_v9 = vmul.f32 %v739_v6, %v739_v6 }
  0xe1   : > { %v740_v10 = vsub.f32 %v726_v1, %v738_v8  ;;  %v743_v11 = vsel %vm729_vm0, %v741_v9, 0.0 }
  0xe2   : > { %744 = vadd.xlane.f32.xlu1 %v743_v11 }
  0xe3   : > { %v742_v12 = vmul.f32 %v740_v10, %v740_v10 }
  0xe5   : > { %v746_v13 = vsel %vm729_vm0, %v742_v12, 0.0 }
  0xe6   : > { %747 = vadd.xlane.f32.xlu1 %v746_v13 }
 0x16b   : > { %v745_v14 = vpop.xlane.xlu1 %744 }
 0x16c   : > { %v749_v15 = vmul.f32 0.03125, %v745_v14 }
 0x16e   : > { %v751_v16 = vadd.f32 1e-12, %v749_v15 }
 0x16f   : > { %v748_v17 = vpop.xlane.xlu1 %747 }
 0x170   : > { %2962 = vrsqrt.f32 %v751_v16  ;;  %v750_v18 = vmul.f32 0.03125, %v748_v17 }
 0x172   : > { %v752_v19 = vadd.f32 1e-12, %v750_v18 }
 0x174   : > { %2964 = vrsqrt.f32 %v752_v19 }
 0x17d   : > { %v2963_v20 = vpop.eup %2962 }
 0x17e   : > { %v755_v22 = vmul.f32 %v2963_v20, %v739_v6 }
 0x180   : > { %v763_v24 = vmul.f32 %v2649_v21, %v755_v22 }
 0x181   : > { %v2965_v25 = vpop.eup %2964 }
 0x182   : > { %v771_v26 = vadd.f32 %v2650_v23, %v763_v24  ;;  %v756_v27 = vmul.f32 %v2965_v25, %v740_v10 }
 0x184   : > { %773 = vst.msk [vmem:[#allocation8] sm:$0xff] %vm729_vm0, %v771_v26  ;;  %v764_v28 = vmul.f32 %v2649_v21, %v756_v27 }
 0x186   : > { %v772_v29 = vadd.f32 %v2650_v23, %v764_v28 }
 0x188   : > { %774 = vst.msk [vmem:[#allocation8 + $0x8] sm:$0xff] %vm729_vm0, %v772_v29 }
 0x189 PF: > { %v2966_v30 = vld [vmem:[%s3326_s29 + $0x8] sm:$0xff]   ;;  %v3145_v31 = vmov 0.0   ;;  %v2967_v32 = vld [vmem:[%s3326_s29] sm:$0xff]   ;;  %vm3146_vm1 = vmmov 0   ;;  %vm801_vm2 = vcmask 261120   ;;  %s3718_s18 = scalar_lea.vmem %s3681_s5, %s3316_s27  ;;  %s3147_s0 = smov 96  }
 0x18a   : > { %2759 = vmatprep.subr.bf16.mxu0 %v3145_v31  ;;  %2772 = vmatprep.subr.mxu1 %v3145_v31  ;;  %v2651_v36 = vld [vmem:[%s3718_s18] ss:$0 sm:$0xff]  ;;  %vm867_vm3 = vcmask 64512   ;;  %v3431_v49 = vld [vmem:[%s3679_s3 + $0x1] ss:$0 sm:$0xff]  ;;  %s3148_s21 = smov 64  }
 0x18b   : > { %2760 = vmatpush3.bf16.msra.mxu0 %v2966_v30  ;;  %2763 = vmatprep.mubr.msk.bf16.mxu0 %vm3146_vm1, %v3145_v31  ;;  %v3386_v33 = vld [vmem:[#allocation8] sm:$0xff]  ;;  %v3425_v45 = vld [vmem:[%s3679_s3] ss:$0 sm:$0xff]  ;;  %s3149_s30 = smov 88   ;;  %vm1051_vm4 = vcmask 1043456   ;;  %s3150_s25 = smov 120  }
 0x18c   : > { %2761 = vmatprep.subr.bf16.mxu0 %v3145_v31  ;;  %2774 = vmatprep.mubr.msk.f32.mxu1 %vm3146_vm1, %v3145_v31  ;;  %s3151_s23 = smov 56   ;;  %s3152_s22 = smov 80   ;;  %vm2350_vm5 = vcmask 523264  }
 0x18d   : > { %s3719_s29 = sld [smem:[#allocation13_spill]]  ;;  %s3153_s18 = smov 112  }
 0x18e   : > { %s3155_s17 = smov 104   ;;  %s3156_s19 = smov 72  }
 0x18f   : > { %v3388_v34 = vld [vmem:[#allocation8 + $0x8] sm:$0xff]  ;;  %2762 = vmatpush3.bf16.msra.mxu0 %v2967_v32  ;;  %s3157_s20 = smov 40   ;;  %p2931_p10 = scmp.eq.s32.totalorder %s3252_s24, 1 }
 0x190   : > { %v781_v35 = vpack.c.bf16 %v3388_v34, %v3386_v33  ;;  %2767 = vmatprep.subr.mxu0 %v3145_v31 }
 0x192   : > { %2764 = vmatmul.mubr.msk.bf16.vlgmr.msra.gmra.mxu0 %vm801_vm2, %v781_v35 }
 0x193   : > { %2769 = vmatprep.mubr.msk.f32.mxu0 %vm3146_vm1, %v3145_v31 }
 0x252   : > { %v839_v37 = vpop.f32.mrf.mxu0 }
 0x253   : > { %v3404_v38 = vadd.f32 %v2651_v36, %v839_v37 }
 0x254   : > { %v2765_v39 = vpop.f32.mrf.mxu0 }
 0x255   : > { %865 = vrot.lane.b32.xlu0 %v3404_v38, %s3147_s0  ;;  %v3438_v55 = vpack.c.bf16 %v3404_v38, %v3404_v38 }
 0x256   : > { %v842_v40 = vpop.f32.mrf.mxu0 }
 0x257   : > { %v3407_v41 = vadd.f32 %v2651_v36, %v842_v40 }
 0x258   : > { %v2766_v42 = vpop.f32.mrf.mxu0 }
 0x259   : > { %943 = vrot.lane.b32.xlu0 %v3407_v41, %s3147_s0  ;;  %v3443_v56 = vpack.c.bf16 %v3407_v41, %v3407_v41  ;;  %s3154_s0 = smov 48  }
 0x2c7   : > { %v866_v43 = vpop.permute.xlu0 %865 }
 0x2c8   : > { %2768 = vmatpush3.xpose.msk.msra.mxu0 %vm867_vm3, %v866_v43 }
 0x2c9   : > { %2783 = vmatprep.subr.bf16.mxu0 %v3145_v31 }
 0x2cb   : > { %2770 = vmatmul.mubr.msk.f32.vlgmr.msra.gmra.mxu0 %vm867_vm3, %v3404_v38  ;;  %v944_v44 = vpop.permute.xlu0 %943 }
 0x2cc   : > { %2773 = vmatpush3.xpose.msk.msra.mxu1 %vm867_vm3, %v944_v44  ;;  %2785 = vmatprep.mubr.msk.bf16.mxu0 %vm3146_vm1, %v3145_v31 }
 0x2cd   : > { %2777 = vmatprep.subr.bf16.mxu1 %v3145_v31 }
 0x2cf   : > { %2775 = vmatmul.mubr.msk.f32.vlgmr.msra.gmra.mxu1 %vm867_vm3, %v3407_v41 }
 0x2d0   : > { %2779 = vmatprep.mubr.msk.bf16.mxu1 %vm3146_vm1, %v3145_v31 }
 0x38b   : > { %v938_v46 = vpop.f32.mrf.mxu0 }
 0x38c   : > { %v939_v47 = vadd.f32 %v3425_v45, %v938_v46 }
 0x38d   : > { %v2771_v48 = vpop.f32.mrf.mxu0 }
 0x38e   : > { %v1019_v50 = vsel %vm867_vm3, %v939_v47, -inf }
 0x38f   : > { %v1015_v51 = vpop.f32.mrf.mxu1  ;;  %1020 = vmax.xlane.f32.xlu1 %v1019_v50 }
 0x390   : > { %v1016_v52 = vadd.f32 %v3431_v49, %v1015_v51 }
 0x391   : > { %v2776_v53 = vpop.f32.mrf.mxu1 }
 0x392   : > { %v1022_v54 = vsel %vm867_vm3, %v1016_v52, -inf }
 0x393   : > { %1023 = vmax.xlane.f32.xlu1 %v1022_v54 }
 0x3a4   : > { %1046 = vrot.lane.b32.xlu1 %v3438_v55, %s3148_s21 }
 0x3a8   : > { %1096 = vrot.lane.b32.xlu1 %v3443_v56, %s3148_s21  ;;  %s3158_s21 = smov [#allocation8]  }
 0x3ac   : > { %1147 = vrot.lane.b32.xlu1 %v3404_v38, %s3149_s30 }
 0x418   : > { %v1021_v57 = vpop.xlane.xlu1 %1020 }
 0x419   : > { %v1025_v58 = vsub.f32 %v939_v47, %v1021_v57 }
 0x41b   : > { %v1027_v59 = vmul.f32 1.442695, %v1025_v58 }
 0x41c   : > { %v1024_v60 = vpop.xlane.xlu1 %1023 }
 0x41d   : > { %2974 = vpow2.f32 %v1027_v59  ;;  %v1026_v61 = vsub.f32 %v1016_v52, %v1024_v60 }
 0x41f   : > { %v1029_v62 = vmul.f32 1.442695, %v1026_v61 }
 0x420   : > { %v1047_v63 = vpop.permute.xlu1 %1046 }
 0x421   : > { %2976 = vpow2.f32 %v1029_v62  ;;  %v1053_v0 = vsel %vm1051_vm4, %v1047_v63, 0 }
 0x422   : > { %2778 = vmatpush3.bf16.msra.mxu1 %v1053_v0 }
 0x423   : > { %2789 = vmatprep.subr.mxu1 %v3145_v31 }
 0x424   : > { %v1097_v1 = vpop.permute.xlu1 %1096 }
 0x425   : > { %v1102_v2 = vsel %vm1051_vm4, %v1097_v1, 0  ;;  %v860_v1 = vld [vmem:[%s3719_s29] sm:$0xf] }
 0x426   : > { %2784 = vmatpush3.bf16.msra.mxu0 %v1102_v2 }
 0x427   : > { %2794 = vmatprep.subr.mxu0 %v3145_v31 }
 0x428   : > { %v1148_v7 = vpop.permute.xlu1 %1147 }
 0x42a   : > { %v2975_v3 = vpop.eup %2974 }
 0x42b   : > { %v1031_v4 = vsel %vm867_vm3, %v2975_v3, 0.0 }
 0x42c   : > { %1032 = vadd.xlane.f32.xlu0 %v1031_v4  ;;  %v1473_v4 = vsel %vm1051_vm4, %v860_v1, 0 }
 0x42e   : > { %v2977_v5 = vpop.eup %2976 }
 0x42f   : > { %v1034_v6 = vsel %vm867_vm3, %v2977_v5, 0.0 }
 0x430   : > { %1035 = vadd.xlane.f32.xlu1 %v1034_v6 }
 0x441   : > { %1225 = vrot.lane.b32.xlu1 %v3407_v41, %s3149_s30  ;;  %s3720_s30 = scalar_lea.vmem %s3683_s7, %s3316_s27 }
 0x442   : > { %1145 = vrot.lane.b32.xlu0 %v3404_v38, %s3150_s25 }
 0x445   : > { %1223 = vrot.lane.b32.xlu1 %v3407_v41, %s3150_s25 }
 0x4b5   : > { %v1033_v8 = vpop.xlane.xlu0 %1032 }
 0x4b6   : > { %2978 = vrcp.f32 %v1033_v8 }
 0x4b9   : > { %v1036_v9 = vpop.xlane.xlu1 %1035  ;;  %v1146_v17 = vpop.permute.xlu0 %1145 }
 0x4ba   : > { %2980 = vrcp.f32 %v1036_v9 }
 0x4bd   : > { %v1226_v16 = vpop.permute.xlu1 %1225 }
 0x4c1   : > { %v1224_v18 = vpop.permute.xlu1 %1223 }
 0x4c3   : > { %v2979_v10 = vpop.eup %2978 }
 0x4c4   : > { %v1039_v11 = vmul.f32 %v2979_v10, %v2975_v3 }
 0x4c6   : > { %v1041_v12 = vpack.c.bf16 %v1039_v11, %v1039_v11 }
 0x4c7   : > { %v2981_v13 = vpop.eup %2980 }
 0x4c8   : > { %2780 = vmatmul.mubr.msk.bf16.vlgmr.msra.gmra.mxu1 %vm867_vm3, %v1041_v12  ;;  %v1040_v14 = vmul.f32 %v2981_v13, %v2977_v5 }
 0x4c9   : > { %2790 = vmatpush3.xpose.msk.msra.mxu1 %vm867_vm3, %v1148_v7  ;;  %2791 = vmatprep.mubr.msk.f32.mxu1 %vm3146_vm1, %v3145_v31  ;;  %v861_v7 = vld [vmem:[%s3719_s29 + $0x4] sm:$0xf] }
 0x4ca   : > { %v1042_v15 = vpack.c.bf16 %v1040_v14, %v1040_v14  ;;  %2799 = vmatprep.subr.bf16.mxu1 %v3145_v31  ;;  %v1426_v8 = vsel %vm1051_vm4, %v861_v7, 0 }
 0x4cc   : > { %2786 = vmatmul.mubr.msk.bf16.vlgmr.msra.gmra.mxu0 %vm867_vm3, %v1042_v15 }
 0x4cd   : > { %2795 = vmatpush3.xpose.msk.msra.mxu0 %vm867_vm3, %v1226_v16  ;;  %2796 = vmatprep.mubr.msk.f32.mxu0 %vm3146_vm1, %v3145_v31 }
 0x4ce   : > { %2805 = vmatprep.subr.bf16.mxu0 %v3145_v31 }
 0x4d0   : > { %2792 = vmatmul.mubr.msk.f32.vlgmr.msra.gmra.mxu1 %vm867_vm3, %v1146_v17 }
 0x4d1   : > { %2801 = vmatprep.mubr.msk.bf16.mxu1 %vm3146_vm1, %v3145_v31 }
 0x4d4   : > { %2797 = vmatmul.mubr.msk.f32.vlgmr.msra.gmra.mxu0 %vm867_vm3, %v1224_v18 }
 0x4d5   : > { %2807 = vmatprep.mubr.msk.bf16.mxu0 %vm3146_vm1, %v3145_v31 }
 0x588   : > { %v3472_v19 = vpop.f32.mrf.mxu1 }
 0x58a   : > { %v2781_v20 = vpop.f32.mrf.mxu1 }
 0x58c   : > { %v1092_v21 = vpop.f32.mrf.mxu1  ;;  %v3474_v22 = vpop.f32.mrf.mxu0 }
 0x58d   : > { %v1144_v23 = vpack.c.bf16 %v3474_v22, %v3472_v19 }
 0x58e   : > { %v2782_v24 = vpop.f32.mrf.mxu1  ;;  %v2787_v25 = vpop.f32.mrf.mxu0 }
 0x590   : > { %v1141_v26 = vpop.f32.mrf.mxu0  ;;  %v1219_v27 = vpop.f32.mrf.mxu1 }
 0x591   : > { %v1220_v28 = vadd.f32 %v3425_v45, %v1219_v27 }
 0x592   : > { %v2788_v29 = vpop.f32.mrf.mxu0  ;;  %v2793_v30 = vpop.f32.mrf.mxu1 }
 0x593   : > { %v1301_v32 = vsel %vm867_vm3, %v1220_v28, -inf }
 0x594   : > { %1302 = vmax.xlane.f32.xlu1 %v1301_v32  ;;  %v1297_v35 = vpop.f32.mrf.mxu0 }
 0x595   : > { %v1298_v36 = vadd.f32 %v3431_v49, %v1297_v35 }
 0x596   : > { %v2798_v37 = vpop.f32.mrf.mxu0 }
 0x597   : > { %v1304_v39 = vsel %vm867_vm3, %v1298_v36, -inf }
 0x598   : > { %1305 = vmax.xlane.f32.xlu0 %v1304_v39 }
 0x5ae   : > { %1373 = vrot.lane.b32.xlu0 %v3443_v56, %s3151_s23 }
 0x5b2   : > { %1518 = vrot.lane.b32.xlu0 %v3404_v38, %s3152_s22 }
 0x61d   : > { %v1303_v40 = vpop.xlane.xlu1 %1302 }
 0x61e   : > { %v1307_v42 = vsub.f32 %v1220_v28, %v1303_v40 }
 0x620   : > { %v1309_v43 = vmul.f32 1.442695, %v1307_v42 }
 0x621   : > { %v1306_v44 = vpop.xlane.xlu0 %1305 }
 0x622   : > { %2982 = vpow2.f32 %v1309_v43  ;;  %v1308_v46 = vsub.f32 %v1298_v36, %v1306_v44 }
 0x624   : > { %v1311_v47 = vmul.f32 1.442695, %v1308_v46 }
 0x625   : > { %v1374_v48 = vpop.permute.xlu0 %1373 }
 0x626   : > { %2984 = vpow2.f32 %v1311_v47  ;;  %v1379_v50 = vsel %vm1051_vm4, %v1374_v48, 0 }
 0x627   : > { %2806 = vmatpush3.bf16.msra.mxu0 %v1379_v50 }
 0x628   : > { %2817 = vmatprep.subr.bf16.mxu0 %v3145_v31 }
 0x629   : > { %v1519_v16 = vpop.permute.xlu0 %1518 }
 0x62f   : > { %v2983_v51 = vpop.eup %2982 }
 0x630   : > { %v1313_v52 = vsel %vm867_vm3, %v2983_v51, 0.0 }
 0x631   : > { %1314 = vadd.xlane.f32.xlu1 %v1313_v52 }
 0x633   : > { %v2985_v53 = vpop.eup %2984 }
 0x634   : > { %v1316_v54 = vsel %vm867_vm3, %v2985_v53, 0.0 }
 0x635   : > { %1317 = vadd.xlane.f32.xlu1 %v1316_v54 }
 0x646   : > { %1325 = vrot.lane.b32.xlu1 %v3438_v55, %s3151_s23 }
 0x64a   : > { %1596 = vrot.lane.b32.xlu1 %v3407_v41, %s3152_s22 }
 0x64e   : > { %1594 = vrot.lane.b32.xlu1 %v3407_v41, %s3153_s18 }
 0x652   : > { %1516 = vrot.lane.b32.xlu1 %v3404_v38, %s3153_s18  ;;  %s3722_s18 = scalar_lea.vmem %s3685_s9, %s3316_s27 }
 0x6ba   : > { %v1315_v57 = vpop.xlane.xlu1 %1314 }
 0x6bb   : > { %2986 = vrcp.f32 %v1315_v57 }
 0x6be   : > { %v1318_v58 = vpop.xlane.xlu1 %1317 }
 0x6bf   : > { %2988 = vrcp.f32 %v1318_v58 }
 0x6c2   : > { %v1326_v59 = vpop.permute.xlu1 %1325 }
 0x6c3   : > { %v1331_v60 = vsel %vm1051_vm4, %v1326_v59, 0 }
 0x6c4   : > { %2800 = vmatpush3.bf16.msra.mxu1 %v1331_v60 }
 0x6c5   : > { %2811 = vmatprep.subr.bf16.mxu1 %v3145_v31 }
 0x6c6   : > { %v1597_v5 = vpop.permute.xlu1 %1596 }
 0x6c8   : > { %v2987_v61 = vpop.eup %2986 }
 0x6c9   : > { %v1321_v62 = vmul.f32 %v2987_v61, %v2983_v51 }
 0x6ca   : > { %v1595_v6 = vpop.permute.xlu1 %1594 }
 0x6cb   : > { %v1323_v63 = vpack.c.bf16 %v1321_v62, %v1321_v62 }
 0x6cc   : > { %v2989_v0 = vpop.eup %2988 }
 0x6cd   : > { %2802 = vmatmul.mubr.msk.bf16.vlgmr.msra.gmra.mxu1 %vm867_vm3, %v1323_v63  ;;  %v1322_v2 = vmul.f32 %v2989_v0, %v2985_v53 }
 0x6ce   : > { %2813 = vmatprep.mubr.msk.bf16.mxu1 %vm3146_vm1, %v3145_v31  ;;  %2812 = vmatpush3.bf16.msra.mxu1 %v1426_v8  ;;  %v1517_v20 = vpop.permute.xlu1 %1516 }
 0x6cf   : > { %v1324_v3 = vpack.c.bf16 %v1322_v2, %v1322_v2  ;;  %2823 = vmatprep.subr.mxu1 %v3145_v31 }
 0x6d1   : > { %2808 = vmatmul.mubr.msk.bf16.vlgmr.msra.gmra.mxu0 %vm867_vm3, %v1324_v3 }
 0x6d2   : > { %2818 = vmatpush3.bf16.msra.mxu0 %v1473_v4  ;;  %2819 = vmatprep.mubr.msk.bf16.mxu0 %vm3146_vm1, %v3145_v31 }
 0x6d3   : > { %2828 = vmatprep.subr.mxu0 %v3145_v31 }
 0x6d9   : > { %2820 = vmatmul.mubr.msk.bf16.vlgmr.msra.gmra.mxu0 %vm867_vm3, %v1144_v23 }
 0x6da   : > { %2829 = vmatpush3.xpose.msk.msra.mxu0 %vm867_vm3, %v1597_v5  ;;  %2830 = vmatprep.mubr.msk.f32.mxu0 %vm3146_vm1, %v3145_v31 }
 0x6db   : > { %2839 = vmatprep.subr.bf16.mxu0 %v3145_v31 }
 0x6e1   : > { %2831 = vmatmul.mubr.msk.f32.vlgmr.msra.gmra.mxu0 %vm867_vm3, %v1595_v6 }
 0x6e2   : > { %2841 = vmatprep.mubr.msk.bf16.mxu0 %vm3146_vm1, %v3145_v31 }
 0x78d   : > { %v1367_v9 = vpop.f32.mrf.mxu1 }
 0x78f   : > { %v2803_v10 = vpop.f32.mrf.mxu1 }
 0x791   : > { %v1370_v11 = vpop.f32.mrf.mxu1  ;;  %v1415_v12 = vpop.f32.mrf.mxu0 }
 0x792   : > { %v1421_v13 = vpack.c.bf16 %v1415_v12, %v1367_v9 }
 0x793   : > { %v2804_v14 = vpop.f32.mrf.mxu1  ;;  %v2809_v15 = vpop.f32.mrf.mxu0 }
 0x794   : > { %2814 = vmatmul.mubr.msk.bf16.vlgmr.msra.gmra.mxu1 %vm867_vm3, %v1421_v13 }
 0x795   : > { %2824 = vmatpush3.xpose.msk.msra.mxu1 %vm867_vm3, %v1519_v16  ;;  %v1418_v17 = vpop.f32.mrf.mxu0  ;;  %2825 = vmatprep.mubr.msk.f32.mxu1 %vm3146_vm1, %v3145_v31 }
 0x796   : > { %2833 = vmatprep.subr.bf16.mxu1 %v3145_v31  ;;  %v862_v17 = vld [vmem:[%s3719_s29 + $0x8] sm:$0xf] }
 0x797   : > { %v2810_v18 = vpop.f32.mrf.mxu0 }
 0x798   : > { %v1797_v18 = vsel %vm1051_vm4, %v862_v17, 0 }
 0x799   : > { %v3522_v19 = vpop.f32.mrf.mxu0 }
 0x79b   : > { %v2821_v21 = vpop.f32.mrf.mxu0 }
 0x79c   : > { %2826 = vmatmul.mubr.msk.f32.vlgmr.msra.gmra.mxu1 %vm867_vm3, %v1517_v20 }
 0x79d   : > { %v3525_v22 = vpop.f32.mrf.mxu0  ;;  %2835 = vmatprep.mubr.msk.bf16.mxu1 %vm3146_vm1, %v3145_v31 }
 0x79f   : > { %v2822_v23 = vpop.f32.mrf.mxu0 }
 0x7a1   : > { %v1668_v24 = vpop.f32.mrf.mxu0 }
 0x7a2   : > { %v1669_v25 = vadd.f32 %v3431_v49, %v1668_v24 }
 0x7a3   : > { %v2832_v26 = vpop.f32.mrf.mxu0 }
 0x7a4   : > { %v1675_v27 = vsel %vm867_vm3, %v1669_v25, -inf }
 0x7a5   : > { %1676 = vmax.xlane.f32.xlu0 %v1675_v27 }
 0x7bb   : > { %1744 = vrot.lane.b32.xlu0 %v3443_v56, %s3154_s0 }
 0x7bf   : > { %1842 = vrot.lane.b32.xlu0 %v3404_v38, %s3155_s17 }
 0x7c3   : > { %1920 = vrot.lane.b32.xlu0 %v3407_v41, %s3155_s17 }
 0x82e   : > { %v1677_v28 = vpop.xlane.xlu0 %1676 }
 0x82f   : > { %v1679_v29 = vsub.f32 %v1669_v25, %v1677_v28 }
 0x831   : > { %v1682_v30 = vmul.f32 1.442695, %v1679_v29 }
 0x832   : > { %v1745_v32 = vpop.permute.xlu0 %1744 }
 0x833   : > { %2990 = vpow2.f32 %v1682_v30  ;;  %v1750_v35 = vsel %vm1051_vm4, %v1745_v32, 0 }
 0x834   : > { %2840 = vmatpush3.bf16.msra.mxu0 %v1750_v35 }
 0x835   : > { %2851 = vmatprep.subr.mxu0 %v3145_v31 }
 0x840   : > { %v2991_v36 = vpop.eup %2990 }
 0x841   : > { %v1687_v37 = vsel %vm867_vm3, %v2991_v36, 0.0 }
 0x842   : > { %1688 = vadd.xlane.f32.xlu1 %v1687_v37 }
 0x853   : > { %1844 = vrot.lane.b32.xlu1 %v3404_v38, %s3156_s19 }
 0x854   : > { %v3539_v39 = vpop.f32.mrf.mxu1 }
 0x856   : > { %v2815_v40 = vpop.f32.mrf.mxu1 }
 0x857   : > { %1922 = vrot.lane.b32.xlu1 %v3407_v41, %s3156_s19  ;;  %v1843_v41 = vpop.permute.xlu0 %1842 }
 0x858   : > { %v3542_v42 = vpop.f32.mrf.mxu1 }
 0x85a   : > { %v2816_v43 = vpop.f32.mrf.mxu1 }
 0x85b   : > { %v1921_v57 = vpop.permute.xlu0 %1920 }
 0x85c   : > { %v1590_v44 = vpop.f32.mrf.mxu1 }
 0x85d   : > { %v1591_v47 = vadd.f32 %v3425_v45, %v1590_v44 }
 0x85e   : > { %v2827_v46 = vpop.f32.mrf.mxu1 }
 0x85f   : > { %v1672_v48 = vsel %vm867_vm3, %v1591_v47, -inf }
 0x87b   : > { %1673 = vmax.xlane.f32.xlu1 %v1672_v48 }
 0x8cb   : > { %v1689_v50 = vpop.xlane.xlu1 %1688 }
 0x8cc   : > { %2992 = vrcp.f32 %v1689_v50 }
 0x8cf   : > { %v1845_v53 = vpop.permute.xlu1 %1844 }
 0x8d3   : > { %v1923_v54 = vpop.permute.xlu1 %1922 }
 0x8d9   : > { %v2993_v51 = vpop.eup %2992 }
 0x8da   : > { %v1693_v52 = vmul.f32 %v2993_v51, %v2991_v36 }
 0x8dc   : > { %v1695_v38 = vpack.c.bf16 %v1693_v52, %v1693_v52 }
 0x8de   : > { %2842 = vmatmul.mubr.msk.bf16.vlgmr.msra.gmra.mxu0 %vm867_vm3, %v1695_v38  ;;  %v863_v38 = vld [vmem:[%s3719_s29 + $0xc] sm:$0xf] }
 0x8df   : > { %2852 = vmatpush3.xpose.msk.msra.mxu0 %vm867_vm3, %v1845_v53  ;;  %2853 = vmatprep.mubr.msk.f32.mxu0 %vm3146_vm1, %v3145_v31  ;;  %v2123_v53 = vsel %vm1051_vm4, %v863_v38, 0  ;;  %v2972_v38 = vld [vmem:[%s3358_s1 + $0x8] sm:$0xff]  }
 0x8e0   : > { %2856 = vmatprep.subr.mxu0 %v3145_v31 }
 0x8e6   : > { %2854 = vmatmul.mubr.msk.f32.vlgmr.msra.gmra.mxu0 %vm867_vm3, %v1843_v41  ;;  %v1510_v41 = vadd.f32 %v3522_v19, %v3539_v39 }
 0x8e7   : > { %2857 = vmatpush3.xpose.msk.msra.mxu0 %vm867_vm3, %v1923_v54  ;;  %2858 = vmatprep.mubr.msk.f32.mxu0 %vm3146_vm1, %v3145_v31 }
 0x8e8   : > { %2867 = vmatprep.subr.bf16.mxu0 %v3145_v31 }
 0x8ea   : > { %2859 = vmatmul.mubr.msk.f32.vlgmr.msra.gmra.mxu0 %vm867_vm3, %v1921_v57 }
 0x8eb   : > { %2869 = vmatprep.mubr.msk.bf16.mxu0 %vm3146_vm1, %v3145_v31 }
 0x904   : > { %v1674_v58 = vpop.xlane.xlu1 %1673 }
 0x905   : > { %v1678_v59 = vsub.f32 %v1591_v47, %v1674_v58 }
 0x907   : > { %v1680_v60 = vmul.f32 1.442695, %v1678_v59  ;;  %v1513_v59 = vadd.f32 %v3525_v22, %v3542_v42  ;;  %v2685_v22 = vld [vmem:[%s3720_s30] ss:$0 sm:$0xff]  ;;  %s2449_s30 = sshll.u32 %s3158_s21, 4  ;;  %s2450_s30 = int_to_ptr.vmem [resolvable:$true] %s2449_s30 }
 0x908   : > { %p3103_p11 = scmp.lt.s32.totalorder %s2450_s30, %s2450_s30 }
 0x909   : > { %2994 = vpow2.f32 %v1680_v60 }
 0x916   : > { %v2995_v61 = vpop.eup %2994 }
 0x917   : > { %v1684_v62 = vsel %vm867_vm3, %v2995_v61, 0.0 }
 0x918   : > { %1685 = vadd.xlane.f32.xlu0 %v1684_v62 }
 0x92e   : > { %1696 = vrot.lane.b32.xlu0 %v3438_v55, %s3154_s0 }
 0x932   : > { %2070 = vrot.lane.b32.xlu0 %v3443_v56, %s3157_s20 }
 0x99e   : > { %v1786_v63 = vpop.f32.mrf.mxu0 }
 0x9a0   : > { %v2843_v0 = vpop.f32.mrf.mxu0 }
 0x9a1   : > { %v1686_v1 = vpop.xlane.xlu0 %1685 }
 0x9a2   : > { %2996 = vrcp.f32 %v1686_v1  ;;  %v1789_v2 = vpop.f32.mrf.mxu0 }
 0x9a4   : > { %v2844_v3 = vpop.f32.mrf.mxu0 }
 0x9a5   : > { %v1697_v4 = vpop.permute.xlu0 %1696 }
 0x9a6   : > { %v1702_v5 = vsel %vm1051_vm4, %v1697_v4, 0  ;;  %v1916_v6 = vpop.f32.mrf.mxu0 }
 0x9a7   : > { %v1917_v7 = vadd.f32 %v3425_v45, %v1916_v6  ;;  %2834 = vmatpush3.bf16.msra.mxu1 %v1702_v5 }
 0x9a8   : > { %v2855_v8 = vpop.f32.mrf.mxu0  ;;  %2845 = vmatprep.subr.bf16.mxu1 %v3145_v31 }
 0x9a9   : > { %v2071_v9 = vpop.permute.xlu0 %2070  ;;  %v1998_v56 = vsel %vm867_vm3, %v1917_v7, -inf }
 0x9aa   : > { %v2076_v10 = vsel %vm1051_vm4, %v2071_v9, 0  ;;  %1999 = vmax.xlane.f32.xlu1 %v1998_v56  ;;  %v1994_v11 = vpop.f32.mrf.mxu0 }
 0x9ab   : > { %v1995_v12 = vadd.f32 %v3431_v49, %v1994_v11  ;;  %2868 = vmatpush3.bf16.msra.mxu0 %v2076_v10 }
 0x9ac   : > { %v2860_v13 = vpop.f32.mrf.mxu0  ;;  %2879 = vmatprep.subr.bf16.mxu0 %v3145_v31 }
 0x9ad   : > { %v2001_v45 = vsel %vm867_vm3, %v1995_v12, -inf }
 0x9ae   : > { %2002 = vmax.xlane.f32.xlu1 %v2001_v45 }
 0x9af   : > { %v2997_v14 = vpop.eup %2996 }
 0x9b0   : > { %v1692_v15 = vmul.f32 %v2997_v14, %v2995_v61 }
 0x9b2   : > { %v1694_v16 = vpack.c.bf16 %v1692_v15, %v1692_v15 }
 0x9b4   : > { %2836 = vmatmul.mubr.msk.bf16.vlgmr.msra.gmra.mxu1 %vm867_vm3, %v1694_v16 }
 0x9b5   : > { %2847 = vmatprep.mubr.msk.bf16.mxu1 %vm3146_vm1, %v3145_v31  ;;  %2846 = vmatpush3.bf16.msra.mxu1 %v1797_v18 }
 0x9b6   : > { %2861 = vmatprep.subr.bf16.mxu1 %v3145_v31 }
 0xa33   : > { %v2000_v49 = vpop.xlane.xlu1 %1999 }
 0xa34   : > { %v2004_v20 = vsub.f32 %v1917_v7, %v2000_v49 }
 0xa36   : > { %v2006_v21 = vmul.f32 1.442695, %v2004_v20 }
 0xa37   : > { %v2003_v23 = vpop.xlane.xlu1 %2002 }
 0xa38   : > { %2998 = vpow2.f32 %v2006_v21  ;;  %v2005_v24 = vsub.f32 %v1995_v12, %v2003_v23 }
 0xa3a   : > { %v2008_v25 = vmul.f32 1.442695, %v2005_v24 }
 0xa3c   : > { %3000 = vpow2.f32 %v2008_v25  ;;  %v2969_v25 = vld [vmem:[%s3348_s4] sm:$0xff]  }
 0xa45   : > { %v2999_v26 = vpop.eup %2998 }
 0xa46   : > { %v2010_v27 = vsel %vm867_vm3, %v2999_v26, 0.0 }
 0xa47   : > { %2011 = vadd.xlane.f32.xlu1 %v2010_v27 }
 0xa49   : > { %v3001_v28 = vpop.eup %3000 }
 0xa4a   : > { %v2013_v29 = vsel %vm867_vm3, %v3001_v28, 0.0 }
 0xa4b   : > { %2014 = vadd.xlane.f32.xlu1 %v2013_v29 }
 0xa5c   : > { %2022 = vrot.lane.b32.xlu1 %v3438_v55, %s3157_s20 }
 0xa74   : > { %v1738_v30 = vpop.f32.mrf.mxu1 }
 0xa75   : > { %v1792_v32 = vpack.c.bf16 %v1786_v63, %v1738_v30 }
 0xa76   : > { %v2837_v35 = vpop.f32.mrf.mxu1 }
 0xa77   : > { %2848 = vmatmul.mubr.msk.bf16.vlgmr.msra.gmra.mxu1 %vm867_vm3, %v1792_v32 }
 0xa78   : > { %v1741_v36 = vpop.f32.mrf.mxu1  ;;  %2863 = vmatprep.mubr.msk.bf16.mxu1 %vm3146_vm1, %v3145_v31 }
 0xa7a   : > { %v2838_v37 = vpop.f32.mrf.mxu1 }
 0xad0   : > { %v2012_v40 = vpop.xlane.xlu1 %2011 }
 0xad1   : > { %3002 = vrcp.f32 %v2012_v40 }
 0xad4   : > { %v2015_v43 = vpop.xlane.xlu1 %2014 }
 0xad5   : > { %3004 = vrcp.f32 %v2015_v43 }
 0xad8   : > { %v2023_v44 = vpop.permute.xlu1 %2022 }
 0xad9   : > { %v2028_v46 = vsel %vm1051_vm4, %v2023_v44, 0 }
 0xada   : > { %2862 = vmatpush3.bf16.msra.mxu1 %v2028_v46  ;;  %v2687_v46 = vld [vmem:[%s3722_s18] ss:$0 sm:$0xff] }
 0xadb   : > { %2873 = vmatprep.subr.bf16.mxu1 %v3145_v31 }
 0xade   : > { %v3003_v55 = vpop.eup %3002 }
 0xadf   : > { %v2018_v47 = vmul.f32 %v3003_v55, %v2999_v26 }
 0xae1   : > { %v2020_v48 = vpack.c.bf16 %v2018_v47, %v2018_v47 }
 0xae2   : > { %v3005_v50 = vpop.eup %3004 }
 0xae3   : > { %2864 = vmatmul.mubr.msk.bf16.vlgmr.msra.gmra.mxu1 %vm867_vm3, %v2020_v48  ;;  %v2019_v51 = vmul.f32 %v3005_v50, %v3001_v28 }
 0xae4   : > { %2875 = vmatprep.mubr.msk.bf16.mxu1 %vm3146_vm1, %v3145_v31  ;;  %2874 = vmatpush3.bf16.msra.mxu1 %v2123_v53  ;;  %v2973_v53 = vld [vmem:[%s3358_s1] sm:$0xff]  }
 0xae5   : > { %v2021_v52 = vpack.c.bf16 %v2019_v51, %v2019_v51  ;;  %2887 = vmatprep.subr.bf16.mxu1 %v3145_v31  ;;  %v2970_v51 = vld [vmem:[%s3358_s1 + $0x18] sm:$0xff]  }
 0xae7   : > { %2870 = vmatmul.mubr.msk.bf16.vlgmr.msra.gmra.mxu0 %vm867_vm3, %v2021_v52  ;;  %v2971_v52 = vld [vmem:[%s3358_s1 + $0x10] sm:$0xff]  }
 0xae8   : > { %2883 = vmatprep.mubr.msk.bf16.mxu0 %vm3146_vm1, %v3145_v31 }
 0xb37   : > { %v1833_v54 = vpop.f32.mrf.mxu1 }
 0xb38   : > { %v1840_v57 = vadd.f32 %v1833_v54, %v1510_v41  ;;  %v2688_v41 = vld [vmem:[%s705_s6] ss:$0 sm:$0xff] }
 0xb39   : > { %v2849_v58 = vpop.f32.mrf.mxu1 }
 0xb3b   : > { %v1836_v60 = vpop.f32.mrf.mxu1 }
 0xb3c   : > { %v1841_v61 = vadd.f32 %v1836_v60, %v1513_v59 }
 0xb3d   : > { %v2850_v62 = vpop.f32.mrf.mxu1 }
 0xba3   : > { %v2064_v63 = vpop.f32.mrf.mxu1 }
 0xba5   : > { %v2865_v0 = vpop.f32.mrf.mxu1 }
 0xba7   : > { %v2067_v1 = vpop.f32.mrf.mxu1  ;;  %v2112_v2 = vpop.f32.mrf.mxu0 }
 0xba8   : > { %v2118_v3 = vpack.c.bf16 %v2112_v2, %v2064_v63 }
 0xba9   : > { %v2866_v4 = vpop.f32.mrf.mxu1  ;;  %v2871_v5 = vpop.f32.mrf.mxu0 }
 0xbaa   : > { %2876 = vmatmul.mubr.msk.bf16.vlgmr.msra.gmra.mxu1 %vm867_vm3, %v2118_v3 }
 0xbab   : > { %v2115_v19 = vpop.f32.mrf.mxu0  ;;  %2895 = vmatprep.mubr.msk.bf16.mxu1 %vm3146_vm1, %v3145_v31  ;;  %2888 = vmatpush3.bf16.msra.mxu1 %v2970_v51 }
 0xbac   : > { %2889 = vmatprep.subr.bf16.mxu1 %v3145_v31 }
 0xbad   : > { %v2872_v39 = vpop.f32.mrf.mxu0 }
 0xbaf   : > { %2890 = vmatpush3.bf16.msra.mxu1 %v2971_v52 }
 0xbb0   : > { %2891 = vmatprep.subr.bf16.mxu1 %v3145_v31 }
 0xbb3   : > { %2892 = vmatpush3.bf16.msra.mxu1 %v2972_v38 }
 0xbb4   : > { %2893 = vmatprep.subr.bf16.mxu1 %v3145_v31 }
 0xbb7   : > { %2894 = vmatpush3.bf16.msra.mxu1 %v2973_v53 }
 0xc6a   : > { %v2159_v6 = vpop.f32.mrf.mxu1 }
 0xc6b   : > { %v2166_v42 = vadd.f32 %v2159_v6, %v1840_v57 }
 0xc6c   : > { %v2877_v7 = vpop.f32.mrf.mxu1 }
 0xc6d   : > { %v2175_v8 = vadd.f32 %v2685_v22, %v2166_v42 }
 0xc6e   : > { %v2162_v9 = vpop.f32.mrf.mxu1 }
 0xc6f   : > { %v2167_v56 = vadd.f32 %v2162_v9, %v1841_v61  ;;  %v2177_v10 = vadd.f32 %v2175_v8, %v3386_v33 }
 0xc70   : > { %v2878_v11 = vpop.f32.mrf.mxu1 }
 0xc71   : > { %v2176_v12 = vadd.f32 %v2685_v22, %v2167_v56  ;;  %v2181_v13 = vsel %vm801_vm2, %v2177_v10, 0.0  ;;  %v2692_v11 = vld [vmem:[%s713_s28] ss:$0 sm:$0xff] }
 0xc72   : > { %2182 = vadd.xlane.f32.xlu0 %v2181_v13 }
 0xc73   : > { %v2178_v45 = vadd.f32 %v2176_v12, %v3388_v34  ;;  %v2968_v34 = vld [vmem:[%s3348_s4 + $0x8] sm:$0xff]   ;;  %s3721_s4 = scalar_lea.vmem %s3684_s8, %s3316_s27 }
 0xc74   : > { %2880 = vmatpush3.bf16.msra.mxu0 %v2968_v34  ;;  %v2686_v37 = vld [vmem:[%s3721_s4] ss:$0 sm:$0xff] }
 0xc75   : > { %v2184_v14 = vsel %vm801_vm2, %v2178_v45, 0.0  ;;  %2881 = vmatprep.subr.bf16.mxu0 %v3145_v31 }
 0xc76   : > { %2185 = vadd.xlane.f32.xlu1 %v2184_v14 }
 0xc78   : > { %2882 = vmatpush3.bf16.msra.mxu0 %v2969_v25 }
 0xcfb   : > { %v2183_v15 = vpop.xlane.xlu0 %2182 }
 0xcfc   : > { %v2188_v16 = vmul.f32 0.03125, %v2183_v15 }
 0xcfe   : > { %v2190_v17 = vsub.f32 %v2177_v10, %v2188_v16 }
 0xcff   : > { %v2186_v18 = vpop.xlane.xlu1 %2185 }
 0xd00   : > { %v2189_v49 = vmul.f32 0.03125, %v2186_v18  ;;  %v2192_v20 = vmul.f32 %v2190_v17, %v2190_v17 }
 0xd02   : > { %v2191_v21 = vsub.f32 %v2178_v45, %v2189_v49  ;;  %v2194_v33 = vsel %vm801_vm2, %v2192_v20, 0.0 }
 0xd03   : > { %2195 = vadd.xlane.f32.xlu0 %v2194_v33 }
 0xd04   : > { %v2193_v23 = vmul.f32 %v2191_v21, %v2191_v21 }
 0xd06   : > { %v2197_v24 = vsel %vm801_vm2, %v2193_v23, 0.0 }
 0xd07   : > { %2198 = vadd.xlane.f32.xlu0 %v2197_v24 }
 0xd8c   : > { %v2196_v26 = vpop.xlane.xlu0 %2195 }
 0xd8d   : > { %v2200_v27 = vmul.f32 0.03125, %v2196_v26 }
 0xd8f   : > { %v2202_v28 = vadd.f32 1e-12, %v2200_v27 }
 0xd90   : > { %v2199_v29 = vpop.xlane.xlu0 %2198 }
 0xd91   : > { %3006 = vrsqrt.f32 %v2202_v28  ;;  %v2201_v30 = vmul.f32 0.03125, %v2199_v29 }
 0xd93   : > { %v2203_v32 = vadd.f32 1e-12, %v2201_v30 }
 0xd95   : > { %3008 = vrsqrt.f32 %v2203_v32 }
 0xd9e   : > { %v3007_v35 = vpop.eup %3006 }
 0xd9f   : > { %v2206_v36 = vmul.f32 %v3007_v35, %v2190_v17 }
 0xda1   : > { %v2214_v44 = vmul.f32 %v2686_v37, %v2206_v36 }
 0xda2   : > { %v3009_v40 = vpop.eup %3008 }
 0xda3   : > { %v2207_v43 = vmul.f32 %v3009_v40, %v2191_v21  ;;  %v2222_v47 = vadd.f32 %v2687_v46, %v2214_v44  ;;  %v2698_v44 = vld [vmem:[%s716_s26] ss:$0 sm:$0xff]  ;;  %s3096_s26 = scalar_lea.vmem %s2450_s30, 256 }
 0xda4   : > { %p3097_p2 = scmp.ne.s32.totalorder %s2450_s30, %s3096_s26  ;;  %p3104_p12 = scmp.lt.s32.totalorder %s3096_s26, %s3096_s26 }
 0xda5   : > { %v2215_v55 = vmul.f32 %v2686_v37, %v2207_v43 }
 0xda6   : > { %p3098_p3 = pnand %p3097_p2, %p2931_p10  ;;  %p3105_p13 = por %p3104_p12, %p3103_p11 }
 0xda7   : > { %v2223_v48 = vadd.f32 %v2687_v46, %v2215_v55  ;;  %v2699_v55 = vld [vmem:[%s719_s16] ss:$0 sm:$0xff] }
 0xda8   : > { %p3099_p4 = pneg %p3098_p3 }
 0xda9   : > { %v2228_v50 = vpack.c.bf16 %v2223_v48, %v2222_v47 }
 0xdaa   : > { %p3106_p0 = pnand %p3105_p13, %p3099_p4 }
 0xdab   : > { %2884 = vmatmul.mubr.msk.bf16.vlgmr.msra.gmra.mxu0 %vm801_vm2, %v2228_v50 }
 0xe6b   : > { %v2285_v54 = vpop.f32.mrf.mxu0 }
 0xe6c   : > { %v2286_v57 = vadd.f32 %v2688_v41, %v2285_v54 }
 0xe6d   : > { %v2885_v58 = vpop.f32.mrf.mxu0 }
 0xe6e   : > { %v2292_v59 = vmul.f32 %v2286_v57, %v2286_v57 }
 0xe6f   : > { %v2288_v60 = vpop.f32.mrf.mxu0 }
 0xe70   : > { %v2294_v61 = vmul.f32 %v2292_v59, %v2286_v57  ;;  %v2289_v62 = vadd.f32 %v2688_v41, %v2288_v60 }
 0xe71   : > { %v2886_v63 = vpop.f32.mrf.mxu0 }
 0xe72   : > { %v2296_v0 = vmul.f32 0.044715, %v2294_v61  ;;  %v2293_v1 = vmul.f32 %v2289_v62, %v2289_v62 }
 0xe74   : > { %v2298_v2 = vadd.f32 %v2296_v0, %v2286_v57  ;;  %v2295_v3 = vmul.f32 %v2293_v1, %v2289_v62 }
 0xe76   : > { %v2300_v31 = vmul.f32 0.7978846, %v2298_v2  ;;  %v2297_v4 = vmul.f32 0.044715, %v2295_v3 }
 0xe78   : > { %3010 = vtanh.f32 %v2300_v31  ;;  %v2299_v5 = vadd.f32 %v2297_v4, %v2289_v62 }
 0xe7a   : > { %v2301_v19 = vmul.f32 0.7978846, %v2299_v5 }
 0xe7c   : > { %3012 = vtanh.f32 %v2301_v19 }
 0xe85   : > { %v3011_v39 = vpop.eup %3010 }
 0xe86   : > { %v2304_v6 = vadd.f32 1.0, %v3011_v39 }
 0xe88   : > { %v2306_v42 = vmul.f32 0.5, %v2304_v6 }
 0xe89   : > { %v3013_v22 = vpop.eup %3012 }
 0xe8a   : > { %v2305_v7 = vadd.f32 1.0, %v3013_v22  ;;  %v2308_v9 = vmul.f32 %v2306_v42, %v2286_v57 }
 0xe8c   : > { %v2307_v8 = vmul.f32 0.5, %v2305_v7 }
 0xe8e   : > { %v2309_v56 = vmul.f32 %v2307_v8, %v2289_v62 }
 0xe90   : > { %v2318_v10 = vpack.c.bf16 %v2309_v56, %v2308_v9 }
 0xe92   : > { %2896 = vmatmul.mubr.msk.bf16.vlgmr.msra.gmra.mxu1 %vm2350_vm5, %v2318_v10 }
 0xf52   : > { %v2388_v12 = vpop.f32.mrf.mxu1 }
 0xf53   : > { %v2389_v13 = vadd.f32 %v2692_v11, %v2388_v12 }
 0xf54   : > { %v2897_v45 = vpop.f32.mrf.mxu1 }
 0xf55   : > { %v2395_v14 = vadd.f32 %v2389_v13, %v2222_v47 }
 0xf56   : > { %v2391_v15 = vpop.f32.mrf.mxu1 }
 0xf57   : > { %v2392_v16 = vadd.f32 %v2692_v11, %v2391_v15  ;;  %v2399_v17 = vsel %vm801_vm2, %v2395_v14, 0.0 }
 0xf58   : > { %2400 = vadd.xlane.f32.xlu0 %v2399_v17  ;;  %v2898_v18 = vpop.f32.mrf.mxu1 }
 0xf59   : > { %v2396_v49 = vadd.f32 %v2392_v16, %v2223_v48 }
 0xf5b   : > { %v2402_v20 = vsel %vm801_vm2, %v2396_v49, 0.0 }
 0xf5c   : > { %2403 = vadd.xlane.f32.xlu0 %v2402_v20 }
 0xfe1   : > { %v2401_v21 = vpop.xlane.xlu0 %2400 }
 0xfe2   : > { %v2405_v33 = vmul.f32 0.03125, %v2401_v21 }
 0xfe4   : > { %v2407_v23 = vsub.f32 %v2395_v14, %v2405_v33 }
 0xfe5   : > { %v2404_v24 = vpop.xlane.xlu0 %2403 }
 0xfe6   : > { %v2406_v34 = vmul.f32 0.03125, %v2404_v24  ;;  %v2409_v25 = vmul.f32 %v2407_v23, %v2407_v23 }
 0xfe8   : > { %v2408_v26 = vsub.f32 %v2396_v49, %v2406_v34  ;;  %v2411_v27 = vsel %vm801_vm2, %v2409_v25, 0.0 }
 0xfe9   : > { %2412 = vadd.xlane.f32.xlu1 %v2411_v27 }
 0xfea   : > { %v2410_v28 = vmul.f32 %v2408_v26, %v2408_v26 }
 0xfec   : > { %v2414_v29 = vsel %vm801_vm2, %v2410_v28, 0.0 }
 0xfed   : > { %2415 = vadd.xlane.f32.xlu0 %v2414_v29 }
0x1072   : > { %v2413_v30 = vpop.xlane.xlu1 %2412 }
0x1073   : > { %v2417_v32 = vmul.f32 0.03125, %v2413_v30 }
0x1075   : > { %v2419_v35 = vadd.f32 1e-12, %v2417_v32 }
0x1076   : > { %v2416_v36 = vpop.xlane.xlu0 %2415 }
0x1077   : > { %3014 = vrsqrt.f32 %v2419_v35  ;;  %v2418_v37 = vmul.f32 0.03125, %v2416_v36 }
0x1079   : > { %v2420_v40 = vadd.f32 1e-12, %v2418_v37 }
0x107b   : > { %3016 = vrsqrt.f32 %v2420_v40 }
0x1084   : > { %v3015_v43 = vpop.eup %3014 }
0x1085   : > { %v2423_v46 = vmul.f32 %v3015_v43, %v2407_v23 }
0x1087   : > { %v2431_v47 = vmul.f32 %v2698_v44, %v2423_v46 }
0x1088   : > { %v3017_v48 = vpop.eup %3016 }
0x1089   : > { %v2424_v50 = vmul.f32 %v3017_v48, %v2408_v26  ;;  %v2439_v51 = vadd.f32 %v2699_v55, %v2431_v47 }
0x108b   : > { %v2432_v52 = vmul.f32 %v2698_v44, %v2424_v50  ;;  %2441 = vst.msk [vmem:[#allocation8] sm:$0xff] %vm801_vm2, %v2439_v51 }
0x108d   : > { %v2440_v38 = vadd.f32 %v2699_v55, %v2432_v52 }
0x108f   : > { %2442 = vst.msk [vmem:[#allocation8 + $0x8] sm:$0xff] %vm801_vm2, %v2440_v38 }
0x1090   : > { %3109 = shalt.err (!%p3106_p0)
}
0x1091   : > { %s3159_s16 = smov 128   ;;  %s3160_s27 = smov 8  }
0x1092   : > { %s3723_s4 = sld [smem:[#allocation19_spill]] }
0x1098   : > { %2912 = dma.vmem_to_hbm [thread:$0]  (%p2931_p10), %s2450_s30, 256, %s3723_s4, [#allocation4], %s3159_s16, %s3159_s16, %s3160_s27  }
0x1099   : > { %3133 = dma.done.wait (%p2931_p10), [#allocation4], 256  }
0x109a   : > { %3135 = vsyncadd (%p2931_p10), [#allocation4], 4294967040 }
0x109b PF: > { %s3724_s22 = sld [smem:[#allocation12_spill]] }
0x10a1   : > { %s29_s21 = sadd.s32 1, %s3724_s22  }
0x10a2   : > { %p26_p7 = scmp.ge.s32.totalorder %s29_s21, 4  }
0x10a4   :  { %28 = sbr.rel (!%p26_p7) target bundleno = 10 (0xa), region = 161 }
0x10a9   :  { %2465 = vsyncpa [#allocation3], 1 }
0x10aa   :  { %2467 = vsyncpa [#allocation3 + $0x1], 1 }
0x10ab   :  { %2468 = vsyncpa [#allocation6], 1 }
0x10ac   :  { %2469 = vsyncpa [#allocation4], 1 }
0x10ad   :  { %2471 = vsyncpa [#allocation4 + $0x1], 1 }

</bundles_post_ra>
